<compile_context>
chip_gen: v7x
topology: tpu7x:2x2x1
jax: 0.10.0
libtpu: 0.0.40
codegen_flags: <defaults>
</compile_context>

<pallas_src>
import functools

import jax
import jax.numpy as jnp
from jax.experimental import pallas as pl
from jax.experimental.pallas import tpu as pltpu

N_GATES = 5  # z, r, n, o, read
LANE = 128
SUBLANE = 8


def _round_up(x, m):
    return (x + m - 1) // m * m


def _cdiv(a, b):
    return (a + b - 1) // b


# ----------------------------------------------------------------------------
# Pallas kernel: one batch tile, both fused matmuls + gates + state update.
# ----------------------------------------------------------------------------
def epgru_kernel(x_ref, m_ref, h_ref, wx_ref, wh_ref, bx_ref, bhn_ref, out_ref,
                 *, dh_p):
    x = x_ref[...]                         # [TB, Dx_p]  bf16
    h = h_ref[...]                         # [TB, Dh_p]  f32 (kept for state blend)
    hb = h.astype(jnp.bfloat16)            # bf16 copy only for the MXU

    # Two fused, lane-dense MXU matmuls (f32 accumulation).
    # bx already contains bh for gates z, r, o, read (folded at pack time);
    # only the n-gate's recurrent bias is applied separately below.
    x_all = jnp.dot(x, wx_ref[...], preferred_element_type=jnp.float32) + bx_ref[...]
    h_all = jnp.dot(hb, wh_ref[...], preferred_element_type=jnp.float32)
    # x_all / h_all : [TB, 5*Dh_p] f32, gates at Dh_p-aligned lane offsets.

    def gate(arr, g):
        return arr[:, g * dh_p:(g + 1) * dh_p]   # static, 128-aligned slice

    # Gate order matches torch.chunk: (z, r, n, o, read).
    z_t = jax.nn.sigmoid(gate(x_all, 0) + gate(h_all, 0))
    r_t = jax.nn.sigmoid(gate(x_all, 1) + gate(h_all, 1))
    # n-gate: recurrent bias must sit inside the r_t multiply.
    n_t = jnp.tanh(gate(x_all, 2) + (gate(h_all, 2) + bhn_ref[...]) * r_t)
    o_t = jax.nn.sigmoid(gate(x_all, 3) + gate(h_all, 3))
    read_t = jax.nn.sigmoid(gate(x_all, 4) + gate(h_all, 4))

    h_prime = n_t * o_t
    m = m_ref[...].astype(jnp.float32)     # m arrives bf16 (tanh-only input)
    h_t = z_t * h + (1.0 - z_t) * h_prime + read_t * jnp.tanh(m)
    out_ref[...] = h_t.astype(out_ref.dtype)


# ----------------------------------------------------------------------------
# Parameter packing: PyTorch Linear layout -> fused, padded, bf16 kernel layout
# ----------------------------------------------------------------------------
def pack_params(Wx, Wh, bx, bh, Dx, Dh):
    """Wx:[5*Dh, Dx], Wh:[5*Dh, Dh], bx/bh:[5*Dh] (PyTorch Linear layout)."""
    Dx_p = _round_up(Dx, LANE)
    Dh_p = _round_up(Dh, LANE)
    N5 = N_GATES * Dh_p

    wx_k = jnp.zeros((Dx_p, N5), jnp.float32)
    wh_k = jnp.zeros((Dh_p, N5), jnp.float32)
    bx_k = jnp.zeros((1, N5), jnp.float32)
    bhn_k = jnp.zeros((1, Dh_p), jnp.float32)   # recurrent bias, n-gate only

    Wx_g = Wx.reshape(N_GATES, Dh, Dx)
    Wh_g = Wh.reshape(N_GATES, Dh, Dh)
    bx_g = bx.reshape(N_GATES, Dh)
    bh_g = bh.reshape(N_GATES, Dh)
    for g in range(N_GATES):
        lo = g * Dh_p
        wx_k = wx_k.at[:Dx, lo:lo + Dh].set(Wx_g[g].T)
        wh_k = wh_k.at[:Dh, lo:lo + Dh].set(Wh_g[g].T)
        if g == 2:
            # n-gate: keep recurrent bias separate (it multiplies with r_t).
            bx_k = bx_k.at[0, lo:lo + Dh].set(bx_g[g])
            bhn_k = bhn_k.at[0, :Dh].set(bh_g[g])
        else:
            # z, r, o, read: fold recurrent bias into the input bias.
            bx_k = bx_k.at[0, lo:lo + Dh].set(bx_g[g] + bh_g[g])

    return dict(
        wx=wx_k.astype(jnp.bfloat16),   # [Dx_p, 5*Dh_p]
        wh=wh_k.astype(jnp.bfloat16),   # [Dh_p, 5*Dh_p]
        bx=bx_k,                        # [1, 5*Dh_p] f32 (bh folded in, except n)
        bhn=bhn_k,                      # [1, Dh_p]   f32 (n-gate recurrent bias)
        Dx_p=Dx_p, Dh_p=Dh_p,
    )


# ----------------------------------------------------------------------------
# VMEM estimate (drives TB choice and vmem_limit_bytes)
# ----------------------------------------------------------------------------
def _vmem_estimate(tb, dx_p, dh_p):
    n5 = N_GATES * dh_p
    weights = (dx_p + dh_p) * n5 * 2                     # bf16, single-buffered
    biases = (n5 + dh_p) * 4                             # f32 resident
    acts_in = 2 * tb * (dx_p * 2 + dh_p * 2 + dh_p * 4)  # x bf16, m bf16, h f32; 2-buf
    acts_out = 2 * tb * dh_p * 4                         # f32 out, 2-buf
    inter = 2 * tb * n5 * 4                              # x_all + h_all f32 live
    return weights + biases + acts_in + acts_out + inter


# ----------------------------------------------------------------------------
# Wrapper: pad to lane/sublane-dense tiles, balanced batch grid, resident weights
# ----------------------------------------------------------------------------
def epgru_cell(x_t, m_t, h_tm1, packed, *, block_b=256):
    B, Dx = x_t.shape
    Dh = h_tm1.shape[1]
    Dx_p, Dh_p = packed["Dx_p"], packed["Dh_p"]
    N5 = N_GATES * Dh_p

    # --- batch tile selection ---------------------------------------------
    # Cap the tile for very wide hidden sizes (keeps the f32 x_all/h_all
    # intermediates modest — matters most on v7x's 64 MiB VMEM; also fine
    # for v5e's 128-tall MXU).
    tb_cap = min(block_b, 128) if Dh_p >= 1024 else block_b
    VMEM_BUDGET = 44 * 1024 * 1024   # conservative so v7x (64 MiB) fits
    while tb_cap > SUBLANE and _vmem_estimate(tb_cap, Dx_p, Dh_p) > VMEM_BUDGET:
        tb_cap //= 2
    tb_cap = max(_round_up(tb_cap, SUBLANE), SUBLANE)

    # Balanced tiles; >= 2 tiles when the batch allows it so both v7x
    # TensorCores get work under dimension_semantics=("parallel",).
    n_tiles = _cdiv(B, tb_cap)
    if B > SUBLANE:
        n_tiles = max(n_tiles, 2)
    TB = _round_up(_cdiv(B, n_tiles), SUBLANE)
    B_p = _round_up(B, TB)
    grid = (B_p // TB,)

    # --- input prep: skip pads/casts when already aligned -------------------
    def _prep(a, rows, cols, dtype):
        if a.dtype != dtype:
            a = a.astype(dtype)
        if a.shape != (rows, cols):
            a = jnp.pad(a, ((0, rows - a.shape[0]), (0, cols - a.shape[1])))
        return a

    x_p = _prep(x_t, B_p, Dx_p, jnp.bfloat16)   # MXU-only operand
    m_p = _prep(m_t, B_p, Dh_p, jnp.bfloat16)   # tanh-only input -> bf16 DMA
    h_p = _prep(h_tm1, B_p, Dh_p, jnp.float32)  # f32 (state blend needs it)

    need = _vmem_estimate(TB, Dx_p, Dh_p)
    vmem_limit = min(max(need + (6 << 20), 32 << 20), 96 << 20)

    kernel = functools.partial(epgru_kernel, dh_p=Dh_p)

    def build(single_buffer_resident):
        # Resident operands: constant index_map -> DMA'd once; Buffered(1)
        # drops the useless second pipeline buffer (halves weight VMEM).
        res_kw = {"pipeline_mode": pl.Buffered(1)} if single_buffer_resident else {}
        in_specs = [
            pl.BlockSpec((TB, Dx_p), lambda i: (i, 0)),             # x  (batch-tiled)
            pl.BlockSpec((TB, Dh_p), lambda i: (i, 0)),             # m
            pl.BlockSpec((TB, Dh_p), lambda i: (i, 0)),             # h
            pl.BlockSpec((Dx_p, N5), lambda i: (0, 0), **res_kw),   # wx (resident)
            pl.BlockSpec((Dh_p, N5), lambda i: (0, 0), **res_kw),   # wh (resident)
            pl.BlockSpec((1, N5), lambda i: (0, 0), **res_kw),      # bx (resident)
            pl.BlockSpec((1, Dh_p), lambda i: (0, 0), **res_kw),    # bh_n (resident)
        ]
        return pl.pallas_call(
            kernel,
            out_shape=jax.ShapeDtypeStruct((B_p, Dh_p), jnp.float32),
            grid_spec=pltpu.PrefetchScalarGridSpec(
                num_scalar_prefetch=0,
                grid=grid,
                in_specs=in_specs,
                out_specs=pl.BlockSpec((TB, Dh_p), lambda i: (i, 0)),
            ),
            compiler_params=pltpu.CompilerParams(
                dimension_semantics=("parallel",),   # 2-TC sharding on v7x
                vmem_limit_bytes=int(vmem_limit),
            ),
        )

    args = (x_p, m_p, h_p, packed["wx"], packed["wh"], packed["bx"], packed["bhn"])
    try:
        out = build(True)(*args)
    except Exception:
        # Fallback for jax versions where pipeline_mode=pl.Buffered(1) is not
        # accepted on a top-level pallas_call BlockSpec.
        out = build(False)(*args)

    if out.shape != (B, Dh):
        out = out[:B, :Dh]
    return out


# ----------------------------------------------------------------------------
# Deterministic parameter init (mirrors reset_parameters shapes/styles)
# ----------------------------------------------------------------------------
def init_params(key, Dx, Dh):
    k1, k2 = jax.random.split(key)

    # input_kernel.weight: [5*Dh, Dx], xavier_uniform_
    fan_in, fan_out = Dx, N_GATES * Dh
    limit = (6.0 / (fan_in + fan_out)) ** 0.5
    Wx = jax.random.uniform(k1, (N_GATES * Dh, Dx), jnp.float32, -limit, limit)

    # recurrent_kernel.weight: [5*Dh, Dh], orthogonal_ (QR of a Gaussian)
    A = jax.random.normal(k2, (N_GATES * Dh, Dh), jnp.float32)
    Q, R = jnp.linalg.qr(A)
    Wh = Q * jnp.sign(jnp.diagonal(R))[None, :]

    # biases zero-initialized
    bx = jnp.zeros((N_GATES * Dh,), jnp.float32)
    bh = jnp.zeros((N_GATES * Dh,), jnp.float32)

    packed = pack_params(Wx, Wh, bx, bh, Dx, Dh)
    return (Wx, Wh, bx, bh), packed


# ----------------------------------------------------------------------------
# Pure-JAX reference (matches the PyTorch forward exactly, f32)
# ----------------------------------------------------------------------------
def epgru_ref(x_t, m_t, h_tm1, Wx, Wh, bx, bh):
    x_proj = x_t @ Wx.T + bx
    h_proj = h_tm1 @ Wh.T + bh
    Dh = h_tm1.shape[-1]
    Xz, Xr, Xn, Xo, Xm = [x_proj[:, g * Dh:(g + 1) * Dh] for g in range(N_GATES)]
    Hz, Hr, Hn, Ho, Hm = [h_proj[:, g * Dh:(g + 1) * Dh] for g in range(N_GATES)]
    z_t = jax.nn.sigmoid(Xz + Hz)
    r_t = jax.nn.sigmoid(Xr + Hr)
    o_t = jax.nn.sigmoid(Xo + Ho)
    read_t = jax.nn.sigmoid(Xm + Hm)
    n_t = jnp.tanh(Xn + Hn * r_t)
    h_prime = n_t * o_t
    return z_t * h_tm1 + (1.0 - z_t) * h_prime + read_t * jnp.tanh(m_t)


if __name__ == "__main__":
    B, Dx, Dh = 4, 16, 32

    key = jax.random.PRNGKey(0)
    kp, kx, km, kh = jax.random.split(key, 4)

    (Wx, Wh, bx, bh), packed = init_params(kp, Dx, Dh)

    x_t = jax.random.normal(kx, (B, Dx), jnp.float32)
    m_t = jax.random.normal(km, (B, Dh), jnp.float32)
    h_tm1 = jax.random.normal(kh, (B, Dh), jnp.float32)

    h_t = epgru_cell(x_t, m_t, h_tm1, packed)
    h_t = jax.block_until_ready(h_t)

    h_ref = epgru_ref(x_t, m_t, h_tm1, Wx, Wh, bx, bh)
    assert h_t.shape == (B, Dh)
    # bf16 matmuls / bf16 m (f32 accumulation & gate math) -> loosened tolerance.
    # TODO(synk): bf16 recurrent projection will drift vs f32 over long rollouts;
    # gate behind a precision flag if exact parity with the f32 cell is needed.
    assert jnp.allclose(h_t, h_ref, atol=2e-2, rtol=2e-2), "mismatch vs reference"

    print("KERNEL_OK")
</pallas_src>

<mosaic_0001>
module attributes {stable_mosaic.version = 11 : i64} {
  func.func @epgru_kernel(%arg0: i32, %arg1: memref<8x128xbf16, #tpu.memory_space<vmem>>, %arg2: memref<8x128xbf16, #tpu.memory_space<vmem>>, %arg3: memref<8x128xf32, #tpu.memory_space<vmem>>, %arg4: memref<128x640xbf16, #tpu.memory_space<vmem>>, %arg5: memref<128x640xbf16, #tpu.memory_space<vmem>>, %arg6: memref<1x640xf32, #tpu.memory_space<vmem>>, %arg7: memref<1x128xf32, #tpu.memory_space<vmem>>, %arg8: memref<8x128xf32, #tpu.memory_space<vmem>>) attributes {dimension_semantics = [#tpu.dimension_semantics<parallel>], iteration_bounds = array<i64: 1>, scalar_prefetch = 0 : i64, scratch_operands = 0 : i64, tpu.core_type = #tpu.core_type<tc>, window_params = [{transform_indices = @transform_0, window_bounds = array<i64: 8, 128>}, {transform_indices = @transform_1, window_bounds = array<i64: 8, 128>}, {transform_indices = @transform_2, window_bounds = array<i64: 8, 128>}, {pipeline_mode = #tpu.pipeline_mode<synchronous>, transform_indices = @transform_3, window_bounds = array<i64: 128, 640>}, {pipeline_mode = #tpu.pipeline_mode<synchronous>, transform_indices = @transform_4, window_bounds = array<i64: 128, 640>}, {pipeline_mode = #tpu.pipeline_mode<synchronous>, transform_indices = @transform_5, window_bounds = array<i64: 1, 640>}, {pipeline_mode = #tpu.pipeline_mode<synchronous>, transform_indices = @transform_6, window_bounds = array<i64: 1, 128>}, {transform_indices = @transform_7, window_bounds = array<i64: 8, 128>}]} {
    %c0 = arith.constant 0 : index
    %c0_0 = arith.constant 0 : index
    %0 = vector.load %arg1[%c0, %c0_0] : memref<8x128xbf16, #tpu.memory_space<vmem>>, vector<8x128xbf16>
    %c0_1 = arith.constant 0 : index
    %c0_2 = arith.constant 0 : index
    %1 = vector.load %arg3[%c0_1, %c0_2] : memref<8x128xf32, #tpu.memory_space<vmem>>, vector<8x128xf32>
    %2 = arith.truncf %1 : vector<8x128xf32> to vector<8x128xbf16>
    %c0_3 = arith.constant 0 : index
    %c0_4 = arith.constant 0 : index
    %3 = vector.load %arg4[%c0_3, %c0_4] : memref<128x640xbf16, #tpu.memory_space<vmem>>, vector<128x640xbf16>
    %cst = arith.constant dense<0.000000e+00> : vector<8x640xf32>
    %4 = tpu.matmul %0, %3, %cst {dimension_numbers = #tpu.dot_dimension_numbers<[1], [0], [0], [1], [0, 0, 1, 1], [], []>} : vector<8x128xbf16>, vector<128x640xbf16>, vector<8x640xf32> -> vector<8x640xf32>
    %c0_5 = arith.constant 0 : index
    %c0_6 = arith.constant 0 : index
    %5 = vector.load %arg6[%c0_5, %c0_6] : memref<1x640xf32, #tpu.memory_space<vmem>>, vector<1x640xf32>
    %6 = vector.broadcast %5 : vector<1x640xf32> to vector<8x640xf32>
    %7 = arith.addf %4, %6 : vector<8x640xf32>
    %c0_7 = arith.constant 0 : index
    %c0_8 = arith.constant 0 : index
    %8 = vector.load %arg5[%c0_7, %c0_8] : memref<128x640xbf16, #tpu.memory_space<vmem>>, vector<128x640xbf16>
    %cst_9 = arith.constant dense<0.000000e+00> : vector<8x640xf32>
    %9 = tpu.matmul %2, %8, %cst_9 {dimension_numbers = #tpu.dot_dimension_numbers<[1], [0], [0], [1], [0, 0, 1, 1], [], []>} : vector<8x128xbf16>, vector<128x640xbf16>, vector<8x640xf32> -> vector<8x640xf32>
    %10 = vector.extract_strided_slice %7 {offsets = [0, 0], sizes = [8, 128], strides = [1, 1]} : vector<8x640xf32> to vector<8x128xf32>
    %11 = vector.extract_strided_slice %9 {offsets = [0, 0], sizes = [8, 128], strides = [1, 1]} : vector<8x640xf32> to vector<8x128xf32>
    %12 = arith.addf %10, %11 : vector<8x128xf32>
    %13 = arith.negf %12 : vector<8x128xf32>
    %14 = math.exp %13 : vector<8x128xf32>
    %cst_10 = arith.constant 1.000000e+00 : f32
    %15 = vector.broadcast %cst_10 : f32 to vector<8x128xf32>
    %16 = arith.addf %15, %14 : vector<8x128xf32>
    %17 = arith.divf %15, %16 : vector<8x128xf32>
    %18 = vector.extract_strided_slice %7 {offsets = [0, 128], sizes = [8, 128], strides = [1, 1]} : vector<8x640xf32> to vector<8x128xf32>
    %19 = vector.extract_strided_slice %9 {offsets = [0, 128], sizes = [8, 128], strides = [1, 1]} : vector<8x640xf32> to vector<8x128xf32>
    %20 = arith.addf %18, %19 : vector<8x128xf32>
    %21 = arith.negf %20 : vector<8x128xf32>
    %22 = math.exp %21 : vector<8x128xf32>
    %cst_11 = arith.constant 1.000000e+00 : f32
    %23 = vector.broadcast %cst_11 : f32 to vector<8x128xf32>
    %24 = arith.addf %23, %22 : vector<8x128xf32>
    %25 = arith.divf %23, %24 : vector<8x128xf32>
    %26 = vector.extract_strided_slice %7 {offsets = [0, 256], sizes = [8, 128], strides = [1, 1]} : vector<8x640xf32> to vector<8x128xf32>
    %27 = vector.extract_strided_slice %9 {offsets = [0, 256], sizes = [8, 128], strides = [1, 1]} : vector<8x640xf32> to vector<8x128xf32>
    %c0_12 = arith.constant 0 : index
    %c0_13 = arith.constant 0 : index
    %28 = vector.load %arg7[%c0_12, %c0_13] : memref<1x128xf32, #tpu.memory_space<vmem>>, vector<1x128xf32>
    %29 = vector.broadcast %28 : vector<1x128xf32> to vector<8x128xf32>
    %30 = arith.addf %27, %29 : vector<8x128xf32>
    %31 = arith.mulf %30, %25 : vector<8x128xf32>
    %32 = arith.addf %26, %31 : vector<8x128xf32>
    %33 = math.tanh %32 : vector<8x128xf32>
    %34 = vector.extract_strided_slice %7 {offsets = [0, 384], sizes = [8, 128], strides = [1, 1]} : vector<8x640xf32> to vector<8x128xf32>
    %35 = vector.extract_strided_slice %9 {offsets = [0, 384], sizes = [8, 128], strides = [1, 1]} : vector<8x640xf32> to vector<8x128xf32>
    %36 = arith.addf %34, %35 : vector<8x128xf32>
    %37 = arith.negf %36 : vector<8x128xf32>
    %38 = math.exp %37 : vector<8x128xf32>
    %cst_14 = arith.constant 1.000000e+00 : f32
    %39 = vector.broadcast %cst_14 : f32 to vector<8x128xf32>
    %40 = arith.addf %39, %38 : vector<8x128xf32>
    %41 = arith.divf %39, %40 : vector<8x128xf32>
    %42 = vector.extract_strided_slice %7 {offsets = [0, 512], sizes = [8, 128], strides = [1, 1]} : vector<8x640xf32> to vector<8x128xf32>
    %43 = vector.extract_strided_slice %9 {offsets = [0, 512], sizes = [8, 128], strides = [1, 1]} : vector<8x640xf32> to vector<8x128xf32>
    %44 = arith.addf %42, %43 : vector<8x128xf32>
    %45 = arith.negf %44 : vector<8x128xf32>
    %46 = math.exp %45 : vector<8x128xf32>
    %cst_15 = arith.constant 1.000000e+00 : f32
    %47 = vector.broadcast %cst_15 : f32 to vector<8x128xf32>
    %48 = arith.addf %47, %46 : vector<8x128xf32>
    %49 = arith.divf %47, %48 : vector<8x128xf32>
    %50 = arith.mulf %33, %41 : vector<8x128xf32>
    %c0_16 = arith.constant 0 : index
    %c0_17 = arith.constant 0 : index
    %51 = vector.load %arg2[%c0_16, %c0_17] : memref<8x128xbf16, #tpu.memory_space<vmem>>, vector<8x128xbf16>
    %52 = arith.extf %51 : vector<8x128xbf16> to vector<8x128xf32>
    %53 = arith.mulf %17, %1 : vector<8x128xf32>
    %cst_18 = arith.constant 1.000000e+00 : f32
    %54 = vector.broadcast %cst_18 : f32 to vector<8x128xf32>
    %55 = arith.subf %54, %17 : vector<8x128xf32>
    %56 = arith.mulf %55, %50 : vector<8x128xf32>
    %57 = arith.addf %53, %56 : vector<8x128xf32>
    %58 = math.tanh %52 : vector<8x128xf32>
    %59 = arith.mulf %49, %58 : vector<8x128xf32>
    %60 = arith.addf %57, %59 : vector<8x128xf32>
    %c0_19 = arith.constant 0 : index
    %c0_20 = arith.constant 0 : index
    %61 = vector.load %arg8[%c0_19, %c0_20] : memref<8x128xf32, #tpu.memory_space<vmem>>, vector<8x128xf32>
    tpu.vector_store %arg8[%c0_19, %c0_20], %60 {strides = array<i32>} : memref<8x128xf32, #tpu.memory_space<vmem>>, vector<8x128xf32>,
    return
  }
  func.func @transform_0(%arg0: i32) -> (i32, i32) {
    %c0_i32 = arith.constant 0 : i32
    %c0_i32_0 = arith.constant 0 : i32
    return %arg0, %c0_i32 : i32, i32
  }
  func.func @transform_1(%arg0: i32) -> (i32, i32) {
    %c0_i32 = arith.constant 0 : i32
    %c0_i32_0 = arith.constant 0 : i32
    return %arg0, %c0_i32 : i32, i32
  }
  func.func @transform_2(%arg0: i32) -> (i32, i32) {
    %c0_i32 = arith.constant 0 : i32
    %c0_i32_0 = arith.constant 0 : i32
    return %arg0, %c0_i32 : i32, i32
  }
  func.func @transform_3(%arg0: i32) -> (i32, i32) {
    %c0_i32 = arith.constant 0 : i32
    %c0_i32_0 = arith.constant 0 : i32
    %c0_i32_1 = arith.constant 0 : i32
    return %c0_i32, %c0_i32_0 : i32, i32
  }
  func.func @transform_4(%arg0: i32) -> (i32, i32) {
    %c0_i32 = arith.constant 0 : i32
    %c0_i32_0 = arith.constant 0 : i32
    %c0_i32_1 = arith.constant 0 : i32
    return %c0_i32, %c0_i32_0 : i32, i32
  }
  func.func @transform_5(%arg0: i32) -> (i32, i32) {
    %c0_i32 = arith.constant 0 : i32
    %c0_i32_0 = arith.constant 0 : i32
    %c0_i32_1 = arith.constant 0 : i32
    return %c0_i32, %c0_i32_0 : i32, i32
  }
  func.func @transform_6(%arg0: i32) -> (i32, i32) {
    %c0_i32 = arith.constant 0 : i32
    %c0_i32_0 = arith.constant 0 : i32
    %c0_i32_1 = arith.constant 0 : i32
    return %c0_i32, %c0_i32_0 : i32, i32
  }
  func.func @transform_7(%arg0: i32) -> (i32, i32) {
    %c0_i32 = arith.constant 0 : i32
    %c0_i32_0 = arith.constant 0 : i32
    return %arg0, %c0_i32 : i32, i32
  }
}

module attributes {stable_mosaic.version = 11 : i64} {
  func.func @epgru_kernel(%arg0: i32, %arg1: memref<8x128xbf16, #tpu.memory_space<vmem>>, %arg2: memref<8x128xbf16, #tpu.memory_space<vmem>>, %arg3: memref<8x128xf32, #tpu.memory_space<vmem>>, %arg4: memref<128x640xbf16, #tpu.memory_space<vmem>>, %arg5: memref<128x640xbf16, #tpu.memory_space<vmem>>, %arg6: memref<1x640xf32, #tpu.memory_space<vmem>>, %arg7: memref<1x128xf32, #tpu.memory_space<vmem>>, %arg8: memref<8x128xf32, #tpu.memory_space<vmem>>) attributes {dimension_semantics = [#tpu.dimension_semantics<parallel>], iteration_bounds = array<i64: 1>, scalar_prefetch = 0 : i64, scratch_operands = 0 : i64, tpu.core_type = #tpu.core_type<tc>, window_params = [{transform_indices = @transform_0, window_bounds = array<i64: 8, 128>}, {transform_indices = @transform_1, window_bounds = array<i64: 8, 128>}, {transform_indices = @transform_2, window_bounds = array<i64: 8, 128>}, {pipeline_mode = #tpu.pipeline_mode<synchronous>, transform_indices = @transform_3, window_bounds = array<i64: 128, 640>}, {pipeline_mode = #tpu.pipeline_mode<synchronous>, transform_indices = @transform_4, window_bounds = array<i64: 128, 640>}, {pipeline_mode = #tpu.pipeline_mode<synchronous>, transform_indices = @transform_5, window_bounds = array<i64: 1, 640>}, {pipeline_mode = #tpu.pipeline_mode<synchronous>, transform_indices = @transform_6, window_bounds = array<i64: 1, 128>}, {transform_indices = @transform_7, window_bounds = array<i64: 8, 128>}]} {
    %c0 = arith.constant 0 : index
    %c0_0 = arith.constant 0 : index
    %0 = vector.load %arg1[%c0, %c0_0] : memref<8x128xbf16, #tpu.memory_space<vmem>>, vector<8x128xbf16>
    %c0_1 = arith.constant 0 : index
    %c0_2 = arith.constant 0 : index
    %1 = vector.load %arg3[%c0_1, %c0_2] : memref<8x128xf32, #tpu.memory_space<vmem>>, vector<8x128xf32>
    %2 = arith.truncf %1 : vector<8x128xf32> to vector<8x128xbf16>
    %c0_3 = arith.constant 0 : index
    %c0_4 = arith.constant 0 : index
    %3 = vector.load %arg4[%c0_3, %c0_4] : memref<128x640xbf16, #tpu.memory_space<vmem>>, vector<128x640xbf16>
    %cst = arith.constant dense<0.000000e+00> : vector<8x640xf32>
    %4 = tpu.matmul %0, %3, %cst {dimension_numbers = #tpu.dot_dimension_numbers<[1], [0], [0], [1], [0, 0, 1, 1], [], []>} : vector<8x128xbf16>, vector<128x640xbf16>, vector<8x640xf32> -> vector<8x640xf32>
    %c0_5 = arith.constant 0 : index
    %c0_6 = arith.constant 0 : index
    %5 = vector.load %arg6[%c0_5, %c0_6] : memref<1x640xf32, #tpu.memory_space<vmem>>, vector<1x640xf32>
    %6 = vector.broadcast %5 : vector<1x640xf32> to vector<8x640xf32>
    %7 = arith.addf %4, %6 : vector<8x640xf32>
    %c0_7 = arith.constant 0 : index
    %c0_8 = arith.constant 0 : index
    %8 = vector.load %arg5[%c0_7, %c0_8] : memref<128x640xbf16, #tpu.memory_space<vmem>>, vector<128x640xbf16>
    %cst_9 = arith.constant dense<0.000000e+00> : vector<8x640xf32>
    %9 = tpu.matmul %2, %8, %cst_9 {dimension_numbers = #tpu.dot_dimension_numbers<[1], [0], [0], [1], [0, 0, 1, 1], [], []>} : vector<8x128xbf16>, vector<128x640xbf16>, vector<8x640xf32> -> vector<8x640xf32>
    %10 = vector.extract_strided_slice %7 {offsets = [0, 0], sizes = [8, 128], strides = [1, 1]} : vector<8x640xf32> to vector<8x128xf32>
    %11 = vector.extract_strided_slice %9 {offsets = [0, 0], sizes = [8, 128], strides = [1, 1]} : vector<8x640xf32> to vector<8x128xf32>
    %12 = arith.addf %10, %11 : vector<8x128xf32>
    %13 = arith.negf %12 : vector<8x128xf32>
    %14 = math.exp %13 : vector<8x128xf32>
    %cst_10 = arith.constant 1.000000e+00 : f32
    %15 = vector.broadcast %cst_10 : f32 to vector<8x128xf32>
    %16 = arith.addf %15, %14 : vector<8x128xf32>
    %17 = arith.divf %15, %16 : vector<8x128xf32>
    %18 = vector.extract_strided_slice %7 {offsets = [0, 128], sizes = [8, 128], strides = [1, 1]} : vector<8x640xf32> to vector<8x128xf32>
    %19 = vector.extract_strided_slice %9 {offsets = [0, 128], sizes = [8, 128], strides = [1, 1]} : vector<8x640xf32> to vector<8x128xf32>
    %20 = arith.addf %18, %19 : vector<8x128xf32>
    %21 = arith.negf %20 : vector<8x128xf32>
    %22 = math.exp %21 : vector<8x128xf32>
    %cst_11 = arith.constant 1.000000e+00 : f32
    %23 = vector.broadcast %cst_11 : f32 to vector<8x128xf32>
    %24 = arith.addf %23, %22 : vector<8x128xf32>
    %25 = arith.divf %23, %24 : vector<8x128xf32>
    %26 = vector.extract_strided_slice %7 {offsets = [0, 256], sizes = [8, 128], strides = [1, 1]} : vector<8x640xf32> to vector<8x128xf32>
    %27 = vector.extract_strided_slice %9 {offsets = [0, 256], sizes = [8, 128], strides = [1, 1]} : vector<8x640xf32> to vector<8x128xf32>
    %c0_12 = arith.constant 0 : index
    %c0_13 = arith.constant 0 : index
    %28 = vector.load %arg7[%c0_12, %c0_13] : memref<1x128xf32, #tpu.memory_space<vmem>>, vector<1x128xf32>
    %29 = vector.broadcast %28 : vector<1x128xf32> to vector<8x128xf32>
    %30 = arith.addf %27, %29 : vector<8x128xf32>
    %31 = arith.mulf %30, %25 : vector<8x128xf32>
    %32 = arith.addf %26, %31 : vector<8x128xf32>
    %33 = math.tanh %32 : vector<8x128xf32>
    %34 = vector.extract_strided_slice %7 {offsets = [0, 384], sizes = [8, 128], strides = [1, 1]} : vector<8x640xf32> to vector<8x128xf32>
    %35 = vector.extract_strided_slice %9 {offsets = [0, 384], sizes = [8, 128], strides = [1, 1]} : vector<8x640xf32> to vector<8x128xf32>
    %36 = arith.addf %34, %35 : vector<8x128xf32>
    %37 = arith.negf %36 : vector<8x128xf32>
    %38 = math.exp %37 : vector<8x128xf32>
    %cst_14 = arith.constant 1.000000e+00 : f32
    %39 = vector.broadcast %cst_14 : f32 to vector<8x128xf32>
    %40 = arith.addf %39, %38 : vector<8x128xf32>
    %41 = arith.divf %39, %40 : vector<8x128xf32>
    %42 = vector.extract_strided_slice %7 {offsets = [0, 512], sizes = [8, 128], strides = [1, 1]} : vector<8x640xf32> to vector<8x128xf32>
    %43 = vector.extract_strided_slice %9 {offsets = [0, 512], sizes = [8, 128], strides = [1, 1]} : vector<8x640xf32> to vector<8x128xf32>
    %44 = arith.addf %42, %43 : vector<8x128xf32>
    %45 = arith.negf %44 : vector<8x128xf32>
    %46 = math.exp %45 : vector<8x128xf32>
    %cst_15 = arith.constant 1.000000e+00 : f32
    %47 = vector.broadcast %cst_15 : f32 to vector<8x128xf32>
    %48 = arith.addf %47, %46 : vector<8x128xf32>
    %49 = arith.divf %47, %48 : vector<8x128xf32>
    %50 = arith.mulf %33, %41 : vector<8x128xf32>
    %c0_16 = arith.constant 0 : index
    %c0_17 = arith.constant 0 : index
    %51 = vector.load %arg2[%c0_16, %c0_17] : memref<8x128xbf16, #tpu.memory_space<vmem>>, vector<8x128xbf16>
    %52 = arith.extf %51 : vector<8x128xbf16> to vector<8x128xf32>
    %53 = arith.mulf %17, %1 : vector<8x128xf32>
    %cst_18 = arith.constant 1.000000e+00 : f32
    %54 = vector.broadcast %cst_18 : f32 to vector<8x128xf32>
    %55 = arith.subf %54, %17 : vector<8x128xf32>
    %56 = arith.mulf %55, %50 : vector<8x128xf32>
    %57 = arith.addf %53, %56 : vector<8x128xf32>
    %58 = math.tanh %52 : vector<8x128xf32>
    %59 = arith.mulf %49, %58 : vector<8x128xf32>
    %60 = arith.addf %57, %59 : vector<8x128xf32>
    %c0_19 = arith.constant 0 : index
    %c0_20 = arith.constant 0 : index
    %61 = vector.load %arg8[%c0_19, %c0_20] : memref<8x128xf32, #tpu.memory_space<vmem>>, vector<8x128xf32>
    tpu.vector_store %arg8[%c0_19, %c0_20], %60 {strides = array<i32>} : memref<8x128xf32, #tpu.memory_space<vmem>>, vector<8x128xf32>,
    return
  }
  func.func @transform_0(%arg0: i32) -> (i32, i32) {
    %c0_i32 = arith.constant 0 : i32
    %c0_i32_0 = arith.constant 0 : i32
    return %arg0, %c0_i32 : i32, i32
  }
  func.func @transform_1(%arg0: i32) -> (i32, i32) {
    %c0_i32 = arith.constant 0 : i32
    %c0_i32_0 = arith.constant 0 : i32
    return %arg0, %c0_i32 : i32, i32
  }
  func.func @transform_2(%arg0: i32) -> (i32, i32) {
    %c0_i32 = arith.constant 0 : i32
    %c0_i32_0 = arith.constant 0 : i32
    return %arg0, %c0_i32 : i32, i32
  }
  func.func @transform_3(%arg0: i32) -> (i32, i32) {
    %c0_i32 = arith.constant 0 : i32
    %c0_i32_0 = arith.constant 0 : i32
    %c0_i32_1 = arith.constant 0 : i32
    return %c0_i32, %c0_i32_0 : i32, i32
  }
  func.func @transform_4(%arg0: i32) -> (i32, i32) {
    %c0_i32 = arith.constant 0 : i32
    %c0_i32_0 = arith.constant 0 : i32
    %c0_i32_1 = arith.constant 0 : i32
    return %c0_i32, %c0_i32_0 : i32, i32
  }
  func.func @transform_5(%arg0: i32) -> (i32, i32) {
    %c0_i32 = arith.constant 0 : i32
    %c0_i32_0 = arith.constant 0 : i32
    %c0_i32_1 = arith.constant 0 : i32
    return %c0_i32, %c0_i32_0 : i32, i32
  }
  func.func @transform_6(%arg0: i32) -> (i32, i32) {
    %c0_i32 = arith.constant 0 : i32
    %c0_i32_0 = arith.constant 0 : i32
    %c0_i32_1 = arith.constant 0 : i32
    return %c0_i32, %c0_i32_0 : i32, i32
  }
  func.func @transform_7(%arg0: i32) -> (i32, i32) {
    %c0_i32 = arith.constant 0 : i32
    %c0_i32_0 = arith.constant 0 : i32
    return %arg0, %c0_i32 : i32, i32
  }
}

</mosaic_0001>

<bundles_post_ra>
// kernel: tpu_custom_call.1
= control target key start
LH: loop header
LB: loop body
LE: loop exit
PB: predicated region body
PF: predicated region fallthrough
CT: control target
= control target key end

     0   :  { %12 = vsyncpa [#allocation3], 0  ;;  %s1554_s0 = inlined_call_operand.hbm [shape: bf16[8,128], index: 0, kind: input, shape index: {}]   ;;  %s1555_s1 = inlined_call_operand.hbm [shape: bf16[8,128], index: 1, kind: input, shape index: {}]   ;;  %s1556_s2 = inlined_call_operand.hbm [shape: f32[8,128], index: 2, kind: input, shape index: {}]   ;;  %s1557_s3 = inlined_call_operand.hbm [shape: bf16[128,640], index: 3, kind: input, shape index: {}]   ;;  %s1558_s4 = inlined_call_operand.hbm [shape: bf16[128,640], index: 4, kind: input, shape index: {}]   ;;  %s1559_s5 = inlined_call_operand.vmem [shape: f32[1,640], index: 5, kind: input, shape index: {}]   ;;  %s1560_s6 = inlined_call_operand.vmem [shape: f32[1,128], index: 6, kind: input, shape index: {}]   ;;  %s1561_s7 = inlined_call_operand.hbm [shape: f32[8,128], index: 7, kind: output, shape index: {}]  }
   0x1   :  { %13 = vsyncpa [#allocation6], 0 }
   0x2   :  { %14 = vsyncpa [#allocation9], 0 }
   0x3   :  { %15 = vsyncpa [#allocation4], 0  ;;  %s1378_s24 = smov [#allocation5]   ;;  %s1379_s26 = smov [#allocation8]  }
   0x4   :  { %s32_s25 = sshll.u32 %s1378_s24, 4  ;;  %s51_s27 = sshll.u32 %s1379_s26, 4  ;;  %s33_s25 = int_to_ptr.vmem [resolvable:$true] %s32_s25  ;;  %s1429_s27 = int_to_ptr.vmem [resolvable:$true] %s51_s27 }
   0x5   :  { %s1238_s30 = scalar_lea.hbm %s1555_s1, 64 }
   0x6   :  { %p1239_p0 = scmp.ne.s32.totalorder %s1555_s1, %s1238_s30  ;;  %p1242_p1 = scmp.lt.u32.totalorder %s1238_s30, %s1555_s1 }
   0x8   :  { %p1244_p2 = pnand %p1242_p1, %p1239_p0 }
   0xa   :  { %1247 = shalt.err (!%p1244_p2)
}
   0xb   :  { %s1248_s12 = scalar_lea.vmem %s33_s25, 64  ;;  %p1253_p4 = scmp.lt.s32.totalorder %s33_s25, %s33_s25 }
   0xc   :  { %p1249_p3 = scmp.ne.s32.totalorder %s33_s25, %s1248_s12  ;;  %p1254_p5 = scmp.lt.s32.totalorder %s1248_s12, %s1248_s12 }
   0xe   :  { %p1255_p6 = por %p1254_p5, %p1253_p4 }
  0x10   :  { %p1256_p7 = pnand %p1255_p6, %p1249_p3 }
  0x12   :  { %1259 = shalt.err (!%p1256_p7)
}
  0x13   :  { %35 = dma.hbm_to_vmem [thread:$0]  %s1555_s1, 64, %s33_s25, [#allocation6]  }
  0x14   :  { %s1260_s17 = scalar_lea.hbm %s1557_s3, 5120 }
  0x15   :  { %p1261_p8 = scmp.ne.s32.totalorder %s1557_s3, %s1260_s17  ;;  %p1264_p9 = scmp.lt.u32.totalorder %s1260_s17, %s1557_s3 }
  0x17   :  { %p1266_p10 = pnand %p1264_p9, %p1261_p8 }
  0x19   :  { %1269 = shalt.err (!%p1266_p10)
}
  0x1a   :  { %s1270_s22 = scalar_lea.vmem %s1429_s27, 5120  ;;  %p1275_p12 = scmp.lt.s32.totalorder %s1429_s27, %s1429_s27 }
  0x1b   :  { %p1271_p11 = scmp.ne.s32.totalorder %s1429_s27, %s1270_s22  ;;  %p1276_p13 = scmp.lt.s32.totalorder %s1270_s22, %s1270_s22 }
  0x1d   :  { %p1277_p0 = por %p1276_p13, %p1275_p12 }
  0x1f   :  { %p1278_p1 = pnand %p1277_p0, %p1271_p11 }
  0x21   :  { %1281 = shalt.err (!%p1278_p1)
}
  0x22   :  { %s1380_s1 = smov 320   ;;  %s1381_s23 = smov 20  }
  0x23   :  { %57 = dma.hbm_to_vmem [thread:$0]  %s1557_s3, 5120, %s1429_s27, [#allocation9], %s1380_s1, %s1380_s1, %s1381_s23  }
  0x24   :  { %s1382_s26 = smov [#allocation2]   ;;  %s1383_s29 = smov [#allocation7]  }
  0x25   :  { %s22_s28 = sshll.u32 %s1382_s26, 4  ;;  %s42_s30 = sshll.u32 %s1383_s29, 4  ;;  %s23_s28 = int_to_ptr.vmem [resolvable:$true] %s22_s28  ;;  %s43_s30 = int_to_ptr.vmem [resolvable:$true] %s42_s30 }
  0x26   :  { %s1282_s10 = scalar_lea.hbm %s1554_s0, 64 }
  0x27   :  { %p1283_p2 = scmp.ne.s32.totalorder %s1554_s0, %s1282_s10  ;;  %p1286_p3 = scmp.lt.u32.totalorder %s1282_s10, %s1554_s0 }
  0x29   :  { %p1288_p4 = pnand %p1286_p3, %p1283_p2 }
  0x2b   :  { %1291 = shalt.err (!%p1288_p4)
}
  0x2c   :  { %s1292_s3 = scalar_lea.vmem %s23_s28, 64  ;;  %p1297_p6 = scmp.lt.s32.totalorder %s23_s28, %s23_s28 }
  0x2d   :  { %p1293_p5 = scmp.ne.s32.totalorder %s23_s28, %s1292_s3  ;;  %p1298_p7 = scmp.lt.s32.totalorder %s1292_s3, %s1292_s3 }
  0x2f   :  { %p1299_p8 = por %p1298_p7, %p1297_p6 }
  0x31   :  { %p1300_p9 = pnand %p1299_p8, %p1293_p5 }
  0x33   :  { %1303 = shalt.err (!%p1300_p9)
}
  0x34   :  { %25 = dma.hbm_to_vmem [thread:$0]  %s1554_s0, 64, %s23_s28, [#allocation3]  }
  0x35   :  { %s1304_s18 = scalar_lea.hbm %s1556_s2, 128 }
  0x36   :  { %p1305_p10 = scmp.ne.s32.totalorder %s1556_s2, %s1304_s18  ;;  %p1308_p11 = scmp.lt.u32.totalorder %s1304_s18, %s1556_s2 }
  0x38   :  { %p1310_p12 = pnand %p1308_p11, %p1305_p10 }
  0x3a   :  { %1313 = shalt.err (!%p1310_p12)
}
  0x3b   :  { %s1314_s24 = scalar_lea.vmem %s43_s30, 128  ;;  %p1319_p0 = scmp.lt.s32.totalorder %s43_s30, %s43_s30 }
  0x3c   :  { %p1315_p13 = scmp.ne.s32.totalorder %s43_s30, %s1314_s24  ;;  %p1320_p1 = scmp.lt.s32.totalorder %s1314_s24, %s1314_s24 }
  0x3e   :  { %p1321_p2 = por %p1320_p1, %p1319_p0 }
  0x40   :  { %p1322_p3 = pnand %p1321_p2, %p1315_p13 }
  0x42   :  { %1325 = shalt.err (!%p1322_p3)
}
  0x43   :  { %45 = dma.hbm_to_vmem [thread:$0]  %s1556_s2, 128, %s43_s30, [#allocation6]  }
  0x44   :  { %s1384_s26 = smov [#allocation10]   ;;  %s1326_s9 = scalar_lea.hbm %s1558_s4, 5120 }
  0x45   :  { %s63_s28 = sshll.u32 %s1384_s26, 4  ;;  %p1327_p4 = scmp.ne.s32.totalorder %s1558_s4, %s1326_s9  ;;  %s64_s28 = int_to_ptr.vmem [resolvable:$true] %s63_s28 }
  0x46   :  { %p1330_p5 = scmp.lt.u32.totalorder %s1326_s9, %s1558_s4 }
  0x48   :  { %p1332_p6 = pnand %p1330_p5, %p1327_p4 }
  0x4a   :  { %1335 = shalt.err (!%p1332_p6)
}
  0x4b   :  { %s1336_s14 = scalar_lea.vmem %s64_s28, 5120  ;;  %p1341_p8 = scmp.lt.s32.totalorder %s64_s28, %s64_s28 }
  0x4c   :  { %p1337_p7 = scmp.ne.s32.totalorder %s64_s28, %s1336_s14  ;;  %p1342_p9 = scmp.lt.s32.totalorder %s1336_s14, %s1336_s14 }
  0x4e   :  { %p1343_p10 = por %p1342_p9, %p1341_p8 }
  0x50   :  { %p1344_p11 = pnand %p1343_p10, %p1337_p7 }
  0x52   :  { %1347 = shalt.err (!%p1344_p11)
}
  0x53   :  { %69 = dma.hbm_to_vmem [thread:$0]  %s1558_s4, 5120, %s64_s28, [#allocation9], %s1380_s1, %s1380_s1, %s1381_s23  }
  0x54   :  { %1370 = dma.done.wait [#allocation3], 64  }
  0x55   :  { %1371 = vsyncadd [#allocation3], 4294967232 }
  0x56   :  { %1372 = dma.done.wait [#allocation6], 192  }
  0x57   :  { %1373 = vsyncadd [#allocation6], 4294967104 }
  0x58   :  { %1374 = dma.done.wait [#allocation9], 10240  }
  0x59   :  { %1375 = vsyncadd [#allocation9], 4294957056  ;;  %v1385_v0 = vmov 0.0   ;;  %v1386_v1 = vmov 0   ;;  %vm1387_vm0 = vmmov 0   ;;  %v1519_v58 = vld [vmem:[#allocation7] sm:$0xff] }
  0x5a   :  { %1046 = vmatprep.subr.bf16.mxu0 %v1385_v0  ;;  %408 = vmatprep.mubr.bf16.mxu1 %v1386_v1  ;;  %v1106_v2 = vld [vmem:[#allocation8 + $0x4] ss:$20 sps:$4 sm:$0xff]   ;;  %v1109_v4 = vld [vmem:[#allocation8] ss:$20 sps:$4 sm:$0xff]   ;;  %v1113_v7 = vld [vmem:[#allocation8 + $0x28] ss:$20 sps:$4 sm:$0xff]   ;;  %v92_v61 = vpack.c.bf16 %v1519_v58, %v1519_v58 }
  0x5b   :  { %1062 = vmatprep.mubr.msk.bf16.mxu0 %vm1387_vm0, %v1385_v0  ;;  %v1108_v3 = vld [vmem:[#allocation8 + $0x10] ss:$20 sps:$4 sm:$0xff]   ;;  %376 = vmatprep.subr.bf16.mxu1 %v1106_v2  ;;  %v1110_v5 = vld [vmem:[#allocation8 + $0x2c] ss:$20 sps:$4 sm:$0xff]   ;;  %v1114_v8 = vld [vmem:[#allocation8 + $0x54] ss:$20 sps:$4 sm:$0xff]  }
  0x5c   :  { %1047 = vmatpush3.bf16.msra.mxu0 %v1108_v3  ;;  %377 = vmatpush1.bf16.msra.mxu1 %v1109_v4  ;;  %v1112_v6 = vld [vmem:[#allocation8 + $0x38] ss:$20 sps:$4 sm:$0xff]   ;;  %v1116_v9 = vld [vmem:[#allocation8 + $0x60] ss:$20 sps:$4 sm:$0xff]   ;;  %v1117_v10 = vld [vmem:[#allocation8 + $0x50] ss:$20 sps:$4 sm:$0xff]  }
  0x5d   :  { %1048 = vmatprep.subr.bf16.mxu0 %v1385_v0  ;;  %378 = vmatprep.subr.bf16.mxu1 %v1110_v5  ;;  %v1118_v11 = vld [vmem:[#allocation8 + $0x7c] ss:$20 sps:$4 sm:$0xff]   ;;  %v1121_v13 = vld [vmem:[#allocation8 + $0x78] ss:$20 sps:$4 sm:$0xff]   ;;  %v1125_v16 = vld [vmem:[#allocation8 + $0xa0] ss:$20 sps:$4 sm:$0xff]  }
  0x5e   :  { %v1120_v12 = vld [vmem:[#allocation8 + $0x88] ss:$20 sps:$4 sm:$0xff]   ;;  %v1122_v14 = vld [vmem:[#allocation8 + $0xa4] ss:$20 sps:$4 sm:$0xff]   ;;  %v1126_v17 = vld [vmem:[#allocation8 + $0xcc] ss:$20 sps:$4 sm:$0xff]  }
  0x5f   :  { %v1124_v15 = vld [vmem:[#allocation8 + $0xb0] ss:$20 sps:$4 sm:$0xff]   ;;  %v1128_v18 = vld [vmem:[#allocation8 + $0xd8] ss:$20 sps:$4 sm:$0xff]   ;;  %v1129_v19 = vld [vmem:[#allocation8 + $0xc8] ss:$20 sps:$4 sm:$0xff]  }
  0x60   :  { %1049 = vmatpush3.bf16.msra.mxu0 %v1112_v6  ;;  %379 = vmatpush1.bf16.msra.mxu1 %v1113_v7  ;;  %v1130_v20 = vld [vmem:[#allocation8 + $0xf4] ss:$20 sps:$4 sm:$0xff]   ;;  %v1133_v22 = vld [vmem:[#allocation8 + $0xf0] ss:$20 sps:$4 sm:$0xff]   ;;  %v1137_v25 = vld [vmem:[#allocation8 + $0x118] ss:$20 sps:$4 sm:$0xff]  }
  0x61   :  { %1050 = vmatprep.subr.bf16.mxu0 %v1385_v0  ;;  %380 = vmatprep.subr.bf16.mxu1 %v1114_v8  ;;  %v1132_v21 = vld [vmem:[#allocation8 + $0x100] ss:$20 sps:$4 sm:$0xff]   ;;  %v1134_v23 = vld [vmem:[#allocation8 + $0x11c] ss:$20 sps:$4 sm:$0xff]   ;;  %v1140_v26 = vld [vmem:[#allocation10 + $0x4] ss:$20 sps:$4 sm:$0xff]  }
  0x62   :  { %v1136_v24 = vld [vmem:[#allocation8 + $0x128] ss:$20 sps:$4 sm:$0xff]   ;;  %v1143_v27 = vld [vmem:[#allocation8 + $0xc] ss:$20 sps:$4 sm:$0xff]   ;;  %v1513_v29 = vld [vmem:[#allocation2] sm:$0xf] }
  0x63   :  { %v1138_v28 = vld [vmem:[#allocation10] ss:$20 sps:$4 sm:$0xff]   ;;  %v1141_v30 = vld [vmem:[#allocation8 + $0x8] ss:$20 sps:$4 sm:$0xff]   ;;  %v1147_v34 = vld [vmem:[#allocation8 + $0x30] ss:$20 sps:$4 sm:$0xff]  }
  0x64   :  { %1051 = vmatpush3.bf16.msra.mxu0 %v1116_v9  ;;  %381 = vmatpush1.bf16.msra.mxu1 %v1117_v10  ;;  %v1146_v31 = vld [vmem:[#allocation10 + $0x2c] ss:$20 sps:$4 sm:$0xff]   ;;  %v1149_v32 = vld [vmem:[#allocation8 + $0x34] ss:$20 sps:$4 sm:$0xff]   ;;  %v1155_v36 = vld [vmem:[#allocation8 + $0x5c] ss:$20 sps:$4 sm:$0xff]  }
  0x65   :  { %1052 = vmatprep.subr.bf16.mxu0 %v1385_v0  ;;  %382 = vmatprep.subr.bf16.mxu1 %v1118_v11  ;;  %v1144_v33 = vld [vmem:[#allocation10 + $0x28] ss:$20 sps:$4 sm:$0xff]   ;;  %v1150_v37 = vld [vmem:[#allocation10 + $0x50] ss:$20 sps:$4 sm:$0xff]   ;;  %v1153_v38 = vld [vmem:[#allocation8 + $0x58] ss:$20 sps:$4 sm:$0xff]  }
  0x66   :  { %v1152_v35 = vld [vmem:[#allocation10 + $0x54] ss:$20 sps:$4 sm:$0xff]   ;;  %v1158_v39 = vld [vmem:[#allocation10 + $0x7c] ss:$20 sps:$4 sm:$0xff]   ;;  %v1161_v40 = vld [vmem:[#allocation8 + $0x84] ss:$20 sps:$4 sm:$0xff]  }
  0x67   :  { %v1156_v41 = vld [vmem:[#allocation10 + $0x78] ss:$20 sps:$4 sm:$0xff]   ;;  %v1159_v42 = vld [vmem:[#allocation8 + $0x80] ss:$20 sps:$4 sm:$0xff]   ;;  %v1165_v46 = vld [vmem:[#allocation8 + $0xa8] ss:$20 sps:$4 sm:$0xff]  }
  0x68   :  { %1053 = vmatpush3.bf16.msra.mxu0 %v1120_v12  ;;  %383 = vmatpush1.bf16.msra.mxu1 %v1121_v13  ;;  %v1164_v43 = vld [vmem:[#allocation10 + $0xa4] ss:$20 sps:$4 sm:$0xff]   ;;  %v1167_v44 = vld [vmem:[#allocation8 + $0xac] ss:$20 sps:$4 sm:$0xff]   ;;  %v1173_v48 = vld [vmem:[#allocation8 + $0xd4] ss:$20 sps:$4 sm:$0xff]  }
  0x69   :  { %1054 = vmatprep.subr.bf16.mxu0 %v1385_v0  ;;  %384 = vmatprep.subr.bf16.mxu1 %v1122_v14  ;;  %v1162_v45 = vld [vmem:[#allocation10 + $0xa0] ss:$20 sps:$4 sm:$0xff]   ;;  %v1168_v49 = vld [vmem:[#allocation10 + $0xc8] ss:$20 sps:$4 sm:$0xff]   ;;  %v1171_v50 = vld [vmem:[#allocation8 + $0xd0] ss:$20 sps:$4 sm:$0xff]  }
  0x6a   :  { %v1170_v47 = vld [vmem:[#allocation10 + $0xcc] ss:$20 sps:$4 sm:$0xff]   ;;  %v1176_v51 = vld [vmem:[#allocation10 + $0xf4] ss:$20 sps:$4 sm:$0xff]   ;;  %v1179_v52 = vld [vmem:[#allocation8 + $0xfc] ss:$20 sps:$4 sm:$0xff]  }
  0x6b   :  { %v1174_v53 = vld [vmem:[#allocation10 + $0xf0] ss:$20 sps:$4 sm:$0xff]   ;;  %v1177_v54 = vld [vmem:[#allocation8 + $0xf8] ss:$20 sps:$4 sm:$0xff]   ;;  %v1183_v59 = vld [vmem:[#allocation8 + $0x120] ss:$20 sps:$4 sm:$0xff]  }
  0x6c   :  { %1055 = vmatpush3.bf16.msra.mxu0 %v1124_v15  ;;  %385 = vmatpush1.bf16.msra.mxu1 %v1125_v16  ;;  %v1182_v55 = vld [vmem:[#allocation10 + $0x11c] ss:$20 sps:$4 sm:$0xff]   ;;  %v1185_v56 = vld [vmem:[#allocation8 + $0x124] ss:$20 sps:$4 sm:$0xff]   ;;  %v1188_v60 = vld [vmem:[#allocation10 + $0xc] ss:$20 sps:$4 sm:$0xff]  }
  0x6d   :  { %1056 = vmatprep.subr.bf16.mxu0 %v1385_v0  ;;  %386 = vmatprep.subr.bf16.mxu1 %v1126_v17  ;;  %v1180_v57 = vld [vmem:[#allocation10 + $0x118] ss:$20 sps:$4 sm:$0xff]   ;;  %v1189_v62 = vld [vmem:[#allocation10 + $0x10] ss:$20 sps:$4 sm:$0xff]   ;;  %v1186_v63 = vld [vmem:[#allocation10 + $0x8] ss:$20 sps:$4 sm:$0xff]  }
  0x6e   :  { %v1192_v2 = vld [vmem:[#allocation10 + $0x34] ss:$20 sps:$4 sm:$0xff]   ;;  %v1193_v3 = vld [vmem:[#allocation10 + $0x38] ss:$20 sps:$4 sm:$0xff]   ;;  %v1190_v4 = vld [vmem:[#allocation10 + $0x30] ss:$20 sps:$4 sm:$0xff]  }
  0x6f   :  { %v1196_v5 = vld [vmem:[#allocation10 + $0x5c] ss:$20 sps:$4 sm:$0xff]   ;;  %v1197_v6 = vld [vmem:[#allocation10 + $0x60] ss:$20 sps:$4 sm:$0xff]   ;;  %v1194_v7 = vld [vmem:[#allocation10 + $0x58] ss:$20 sps:$4 sm:$0xff]  }
  0x70   :  { %1057 = vmatpush3.bf16.msra.mxu0 %v1128_v18  ;;  %387 = vmatpush1.bf16.msra.mxu1 %v1129_v19  ;;  %v1200_v8 = vld [vmem:[#allocation10 + $0x84] ss:$20 sps:$4 sm:$0xff]   ;;  %v1201_v9 = vld [vmem:[#allocation10 + $0x88] ss:$20 sps:$4 sm:$0xff]   ;;  %v1198_v10 = vld [vmem:[#allocation10 + $0x80] ss:$20 sps:$4 sm:$0xff]  }
  0x71   :  { %1058 = vmatprep.subr.bf16.mxu0 %v1385_v0  ;;  %388 = vmatprep.subr.bf16.mxu1 %v1130_v20  ;;  %v1204_v11 = vld [vmem:[#allocation10 + $0xac] ss:$20 sps:$4 sm:$0xff]   ;;  %v1205_v12 = vld [vmem:[#allocation10 + $0xb0] ss:$20 sps:$4 sm:$0xff]   ;;  %v1208_v13 = vld [vmem:[#allocation10 + $0xd4] ss:$20 sps:$4 sm:$0xff]  }
  0x72   :  { %v1209_v14 = vld [vmem:[#allocation10 + $0xd8] ss:$20 sps:$4 sm:$0xff]   ;;  %v1206_v15 = vld [vmem:[#allocation10 + $0xd0] ss:$20 sps:$4 sm:$0xff]   ;;  %v1213_v17 = vld [vmem:[#allocation10 + $0x100] ss:$20 sps:$4 sm:$0xff]  }
  0x73   :  { %v1212_v16 = vld [vmem:[#allocation10 + $0xfc] ss:$20 sps:$4 sm:$0xff]   ;;  %v1210_v18 = vld [vmem:[#allocation10 + $0xf8] ss:$20 sps:$4 sm:$0xff]  }
  0x74   :  { %1059 = vmatpush3.bf16.msra.mxu0 %v1132_v21  ;;  %389 = vmatpush1.bf16.msra.mxu1 %v1133_v22  ;;  %v1216_v19 = vld [vmem:[#allocation10 + $0x124] ss:$20 sps:$4 sm:$0xff]   ;;  %v1217_v20 = vld [vmem:[#allocation10 + $0x128] ss:$20 sps:$4 sm:$0xff]   ;;  %v1214_v21 = vld [vmem:[#allocation10 + $0x120] ss:$20 sps:$4 sm:$0xff]  }
  0x75   :  { %1060 = vmatprep.subr.bf16.mxu0 %v1385_v0  ;;  %390 = vmatprep.subr.bf16.mxu1 %v1134_v23 }
  0x78   :  { %1061 = vmatpush3.bf16.msra.mxu0 %v1136_v24  ;;  %391 = vmatpush1.bf16.msra.mxu1 %v1137_v25 }
  0x79   :  { %754 = vmatprep.subr.bf16.mxu0 %v1140_v26  ;;  %417 = vmatprep.subr.bf16.mxu1 %v1143_v27  ;;  %v143_v26 = vlaneseq }
  0x7b   :  { %1063 = vmatmul.mubr.bf16.vlgmr.msra.gmra.mrb[0].mxu0 %v1513_v29  ;;  %409 = vmatmul.mubr.bf16.vlgmr.msra.gmra.mrb[0].mxu1 %v1513_v29  ;;  %v144_v27 = vshrl.u32 %v143_v26, 7 }
  0x7c   :  { %755 = vmatpush1.bf16.msra.mxu0 %v1138_v28  ;;  %418 = vmatpush1.bf16.msra.mxu1 %v1141_v30 }
  0x7d   :  { %756 = vmatprep.subr.bf16.mxu0 %v1146_v31  ;;  %419 = vmatprep.subr.bf16.mxu1 %v1149_v32  ;;  %v145_v28 = vsub.s32 0, %v144_v27  ;;  %v149_v30 = vsub.s32 1, %v144_v27 }
  0x7e   :  { %786 = vmatprep.mubr.bf16.mxu0 %v1386_v1  ;;  %449 = vmatprep.mubr.bf16.mxu1 %v1386_v1 }
  0x80   :  { %757 = vmatpush1.bf16.msra.mxu0 %v1144_v33  ;;  %420 = vmatpush1.bf16.msra.mxu1 %v1147_v34 }
  0x81   :  { %758 = vmatprep.subr.bf16.mxu0 %v1152_v35  ;;  %421 = vmatprep.subr.bf16.mxu1 %v1155_v36 }
  0x84   :  { %759 = vmatpush1.bf16.msra.mxu0 %v1150_v37  ;;  %422 = vmatpush1.bf16.msra.mxu1 %v1153_v38 }
  0x85   :  { %760 = vmatprep.subr.bf16.mxu0 %v1158_v39  ;;  %423 = vmatprep.subr.bf16.mxu1 %v1161_v40 }
  0x88   :  { %761 = vmatpush1.bf16.msra.mxu0 %v1156_v41  ;;  %424 = vmatpush1.bf16.msra.mxu1 %v1159_v42 }
  0x89   :  { %762 = vmatprep.subr.bf16.mxu0 %v1164_v43  ;;  %425 = vmatprep.subr.bf16.mxu1 %v1167_v44 }
  0x8c   :  { %763 = vmatpush1.bf16.msra.mxu0 %v1162_v45  ;;  %426 = vmatpush1.bf16.msra.mxu1 %v1165_v46 }
  0x8d   :  { %764 = vmatprep.subr.bf16.mxu0 %v1170_v47  ;;  %427 = vmatprep.subr.bf16.mxu1 %v1173_v48  ;;  %v157_v47 = vsub.s32 3, %v144_v27  ;;  %v161_v48 = vsub.s32 4, %v144_v27 }
  0x90   :  { %765 = vmatpush1.bf16.msra.mxu0 %v1168_v49  ;;  %428 = vmatpush1.bf16.msra.mxu1 %v1171_v50  ;;  %v153_v49 = vsub.s32 2, %v144_v27 }
  0x91   :  { %766 = vmatprep.subr.bf16.mxu0 %v1176_v51  ;;  %429 = vmatprep.subr.bf16.mxu1 %v1179_v52 }
  0x94   :  { %767 = vmatpush1.bf16.msra.mxu0 %v1174_v53  ;;  %430 = vmatpush1.bf16.msra.mxu1 %v1177_v54  ;;  %v1025_v53 = vld [vmem:[%s1560_s6] ss:$0 sm:$0xff]  ;;  %s1388_s6 = smov [#allocation11]  }
  0x95   :  { %768 = vmatprep.subr.bf16.mxu0 %v1182_v55  ;;  %431 = vmatprep.subr.bf16.mxu1 %v1185_v56  ;;  %s932_s3 = sshll.u32 %s1388_s6, 4  ;;  %s933_s3 = int_to_ptr.vmem [resolvable:$true] %s932_s3 }
  0x96   :  { %s1348_s27 = scalar_lea.vmem %s933_s3, 128  ;;  %p1353_p13 = scmp.lt.s32.totalorder %s933_s3, %s933_s3 }
  0x97   :  { %p1349_p12 = scmp.ne.s32.totalorder %s933_s3, %s1348_s27  ;;  %p1354_p0 = scmp.lt.s32.totalorder %s1348_s27, %s1348_s27 }
  0x98   :  { %769 = vmatpush1.bf16.msra.mxu0 %v1180_v57  ;;  %432 = vmatpush1.bf16.msra.mxu1 %v1183_v59 }
  0x99   :  { %1066 = vmatprep.subr.bf16.mxu0 %v1385_v0  ;;  %795 = vmatprep.subr.bf16.mxu1 %v1188_v60  ;;  %p1355_p1 = por %p1354_p0, %p1353_p13 }
  0x9b   :  { %787 = vmatmul.mubr.bf16.vlgmr.msra.gmra.mrb[4].mxu0 %v92_v61  ;;  %450 = vmatmul.mubr.bf16.vlgmr.msra.gmra.mrb[4].mxu1 %v1513_v29  ;;  %v141_v29 = vld [vmem:[%s1559_s5] sm:$0x1f]  ;;  %p1356_p2 = pnand %p1355_p1, %p1349_p12 }
  0x9c   :  { %1067 = vmatpush3.bf16.msra.mxu0 %v1189_v62  ;;  %796 = vmatpush1.bf16.msra.mxu1 %v1186_v63  ;;  %v146_v31 = vrot.slane %v141_v29, %v145_v28  ;;  %v158_v51 = vrot.slane %v141_v29, %v157_v47  ;;  %v162_v52 = vrot.slane %v141_v29, %v161_v48 }
  0x9d   :  { %1068 = vmatprep.subr.bf16.mxu0 %v1385_v0  ;;  %797 = vmatprep.subr.bf16.mxu1 %v1192_v2  ;;  %v154_v54 = vrot.slane %v141_v29, %v153_v49 }
  0x9e   :  { %1082 = vmatprep.mubr.msk.bf16.mxu0 %vm1387_vm0, %v1385_v0  ;;  %827 = vmatprep.mubr.bf16.mxu1 %v1386_v1  ;;  %v1202_v1 = vld [vmem:[#allocation10 + $0xa8] ss:$20 sps:$4 sm:$0xff]  }
  0xa0   :  { %1069 = vmatpush3.bf16.msra.mxu0 %v1193_v3  ;;  %798 = vmatpush1.bf16.msra.mxu1 %v1190_v4 }
  0xa1   :  { %1070 = vmatprep.subr.bf16.mxu0 %v1385_v0  ;;  %799 = vmatprep.subr.bf16.mxu1 %v1196_v5 }
  0xa4   :  { %1071 = vmatpush3.bf16.msra.mxu0 %v1197_v6  ;;  %800 = vmatpush1.bf16.msra.mxu1 %v1194_v7 }
  0xa5   :  { %1072 = vmatprep.subr.bf16.mxu0 %v1385_v0  ;;  %801 = vmatprep.subr.bf16.mxu1 %v1200_v8 }
  0xa8   :  { %1073 = vmatpush3.bf16.msra.mxu0 %v1201_v9  ;;  %802 = vmatpush1.bf16.msra.mxu1 %v1198_v10 }
  0xa9   :  { %1074 = vmatprep.subr.bf16.mxu0 %v1385_v0  ;;  %803 = vmatprep.subr.bf16.mxu1 %v1204_v11 }
  0xac   :  { %1075 = vmatpush3.bf16.msra.mxu0 %v1205_v12  ;;  %804 = vmatpush1.bf16.msra.mxu1 %v1202_v1 }
  0xad   :  { %1076 = vmatprep.subr.bf16.mxu0 %v1385_v0  ;;  %805 = vmatprep.subr.bf16.mxu1 %v1208_v13  ;;  %v916_v13 = vld [vmem:[#allocation5] sm:$0xf] }
  0xb0   :  { %1077 = vmatpush3.bf16.msra.mxu0 %v1209_v14  ;;  %806 = vmatpush1.bf16.msra.mxu1 %v1206_v15 }
  0xb1   :  { %1078 = vmatprep.subr.bf16.mxu0 %v1385_v0  ;;  %807 = vmatprep.subr.bf16.mxu1 %v1212_v16  ;;  %v917_v16 = vunpack.c.l.bf16 %v916_v13 }
  0xb4   :  { %1079 = vmatpush3.bf16.msra.mxu0 %v1213_v17  ;;  %808 = vmatpush1.bf16.msra.mxu1 %v1210_v18 }
  0xb5   :  { %1080 = vmatprep.subr.bf16.mxu0 %v1385_v0  ;;  %809 = vmatprep.subr.bf16.mxu1 %v1216_v19  ;;  %v150_v0 = vrot.slane %v141_v29, %v149_v30 }
  0xb8   :  { %1081 = vmatpush3.bf16.msra.mxu0 %v1217_v20  ;;  %810 = vmatpush1.bf16.msra.mxu1 %v1214_v21 }
  0xbb   :  { %1083 = vmatmul.mubr.bf16.vlgmr.msra.gmra.mrb[0].mxu0 %v92_v61  ;;  %828 = vmatmul.mubr.bf16.vlgmr.msra.gmra.mrb[8].mxu1 %v92_v61 }
 0x14e   :  { %v410_v22 = vpop.f32.mrb[0].mxu1 }
 0x14f   :  { %v412_v23 = vpop.f32.mrb[1].mxu1  ;;  %v411_v32 = vadd.f32 %v410_v22, %v146_v31 }
 0x150   :  { %v414_v24 = vpop.f32.mrb[2].mxu1  ;;  %v413_v33 = vadd.f32 %v412_v23, %v150_v0 }
 0x151   :  { %v415_v25 = vpop.f32.mrb[3].mxu1 }
 0x16e   :  { %v788_v34 = vpop.f32.mrb[4].mxu0  ;;  %v451_v36 = vpop.f32.mrb[4].mxu1 }
 0x16f   :  { %v876_v35 = vadd.f32 %v788_v34, %v411_v32  ;;  %v790_v37 = vpop.f32.mrb[5].mxu0  ;;  %v453_v39 = vpop.f32.mrb[5].mxu1  ;;  %v452_v7 = vadd.f32 %v451_v36, %v154_v54 }
 0x170   :  { %v883_v38 = vadd.f32 %v790_v37, %v413_v33  ;;  %v792_v40 = vpop.f32.mrb[6].mxu0  ;;  %v455_v41 = vpop.f32.mrb[6].mxu1  ;;  %v454_v56 = vadd.f32 %v453_v39, %v158_v51 }
 0x171   :  { %v793_v42 = vpop.f32.mrb[7].mxu0  ;;  %v456_v44 = vpop.f32.mrb[7].mxu1  ;;  %v1023_v50 = vmul.f32 -1.442695, %v876_v35 }
 0x172   :  { %v1024_v43 = vmul.f32 -1.442695, %v883_v38 }
 0x174   :  { %1218 = vpow2.f32 %v1024_v43 }
 0x17e   :  { %v1219_v45 = vpop.eup %1218 }
 0x17f   :  { %v887_v46 = vadd.f32 1.0, %v1219_v45 }
 0x181   :  { %1220 = vrcp.f32 %v887_v46 }
 0x182   :  { %1222 = vpow2.f32 %v1023_v50 }
 0x18b   :  { %v1221_v2 = vpop.eup %1220 }
 0x18c   :  { %v1223_v12 = vpop.eup %1222 }
 0x18d   :  { %v880_v1 = vadd.f32 1.0, %v1223_v12 }
 0x18e   :  { %v870_v55 = vpop.f32.mrb[0].mxu0  ;;  %v829_v59 = vpop.f32.mrb[8].mxu1 }
 0x18f   :  { %v1090_v57 = vadd.f32 %v870_v55, %v162_v52  ;;  %v1084_v60 = vpop.f32.mrb[1].mxu0  ;;  %v897_v61 = vadd.f32 %v1025_v53, %v829_v59  ;;  %v831_v62 = vpop.f32.mrb[9].mxu1 }
 0x190   :  { %v873_v63 = vpop.f32.mrb[2].mxu0  ;;  %v901_v4 = vadd.f32 %v831_v62, %v454_v56  ;;  %v833_v5 = vpop.f32.mrb[10].mxu1 }
 0x191   :  { %v1027_v3 = vmul.f32 -1.442695, %v1090_v57  ;;  %v1085_v6 = vpop.f32.mrb[3].mxu0  ;;  %v898_v8 = vmul.f32 %v1221_v2, %v897_v61  ;;  %v834_v9 = vpop.f32.mrb[11].mxu1 }
 0x192   :  { %v1026_v10 = vmul.f32 -1.442695, %v901_v4 }
 0x193   :  { %1224 = vpow2.f32 %v1027_v3  ;;  %v899_v11 = vadd.f32 %v898_v8, %v452_v7 }
 0x194   :  { %1226 = vpow2.f32 %v1026_v10 }
 0x195   :  { %1228 = vrcp.f32 %v880_v1 }
 0x196   :  { %1230 = vtanh.f32 %v899_v11 }
 0x19d   :  { %v1225_v14 = vpop.eup %1224 }
 0x19e   :  { %v1227_v15 = vpop.eup %1226  ;;  %v912_v17 = vadd.f32 1.0, %v1225_v14 }
 0x19f   :  { %v905_v18 = vadd.f32 1.0, %v1227_v15  ;;  %v1229_v19 = vpop.eup %1228 }
 0x1a0   :  { %v1231_v20 = vpop.eup %1230  ;;  %v919_v24 = vsub.f32 1.0, %v1229_v19  ;;  %v918_v26 = vmul.f32 %v1229_v19, %v1519_v58 }
 0x1a1   :  { %1232 = vrcp.f32 %v905_v18 }
 0x1a2   :  { %1234 = vtanh.f32 %v917_v16 }
 0x1a3   :  { %1236 = vrcp.f32 %v912_v17 }
 0x1ab   :  { %v1233_v21 = vpop.eup %1232 }
 0x1ac   :  { %v1235_v22 = vpop.eup %1234  ;;  %v915_v23 = vmul.f32 %v1233_v21, %v1231_v20 }
 0x1ad   :  { %v1237_v25 = vpop.eup %1236 }
 0x1ae   :  { %v920_v27 = vmul.f32 %v919_v24, %v915_v23  ;;  %v923_v29 = vmul.f32 %v1237_v25, %v1235_v22 }
 0x1b0   :  { %v921_v28 = vadd.f32 %v920_v27, %v918_v26 }
 0x1b2   :  { %v924_v30 = vadd.f32 %v923_v29, %v921_v28 }
 0x1b4   :  { %925 = vst [vmem:[#allocation11] sm:$0xff] %v924_v30 }
 0x1b5   :  { %1359 = shalt.err (!%p1356_p2)
}
 0x1b6   :  { %s1360_s17 = scalar_lea.hbm %s1561_s7, 128 }
 0x1b7   :  { %p1361_p3 = scmp.ne.s32.totalorder %s1561_s7, %s1360_s17  ;;  %p1364_p4 = scmp.lt.u32.totalorder %s1360_s17, %s1561_s7 }
 0x1b9   :  { %p1366_p5 = pnand %p1364_p4, %p1361_p3 }
 0x1bb   :  { %1369 = shalt.err (!%p1366_p5)
}
 0x1bc   :  { %935 = dma.vmem_to_hbm [thread:$0]  %s933_s3, 128, %s1561_s7, [#allocation4]  }
 0x1bd   :  { %1376 = dma.done.wait [#allocation4], 128  }
 0x1be   :  { %1377 = vsyncadd [#allocation4], 4294967168 }
 0x1bf   :  { %939 = vsyncpa [#allocation3], 1 }
 0x1c0   :  { %940 = vsyncpa [#allocation6], 1 }
 0x1c1   :  { %941 = vsyncpa [#allocation9], 1 }
 0x1c2   :  { %942 = vsyncpa [#allocation4], 1 }

// kernel: tpu_custom_call.1
= control target key start
LH: loop header
LB: loop body
LE: loop exit
PB: predicated region body
PF: predicated region fallthrough
CT: control target
= control target key end

     0   :  { %12 = vsyncpa [#allocation3], 0  ;;  %s1554_s0 = inlined_call_operand.hbm [shape: bf16[8,128], index: 0, kind: input, shape index: {}]   ;;  %s1555_s1 = inlined_call_operand.hbm [shape: bf16[8,128], index: 1, kind: input, shape index: {}]   ;;  %s1556_s2 = inlined_call_operand.hbm [shape: f32[8,128], index: 2, kind: input, shape index: {}]   ;;  %s1557_s3 = inlined_call_operand.hbm [shape: bf16[128,640], index: 3, kind: input, shape index: {}]   ;;  %s1558_s4 = inlined_call_operand.hbm [shape: bf16[128,640], index: 4, kind: input, shape index: {}]   ;;  %s1559_s5 = inlined_call_operand.vmem [shape: f32[1,640], index: 5, kind: input, shape index: {}]   ;;  %s1560_s6 = inlined_call_operand.vmem [shape: f32[1,128], index: 6, kind: input, shape index: {}]   ;;  %s1561_s7 = inlined_call_operand.hbm [shape: f32[8,128], index: 7, kind: output, shape index: {}]  }
   0x1   :  { %13 = vsyncpa [#allocation6], 0 }
   0x2   :  { %14 = vsyncpa [#allocation9], 0 }
   0x3   :  { %15 = vsyncpa [#allocation4], 0  ;;  %s1378_s24 = smov [#allocation5]   ;;  %s1379_s26 = smov [#allocation8]  }
   0x4   :  { %s32_s25 = sshll.u32 %s1378_s24, 4  ;;  %s51_s27 = sshll.u32 %s1379_s26, 4  ;;  %s33_s25 = int_to_ptr.vmem [resolvable:$true] %s32_s25  ;;  %s1429_s27 = int_to_ptr.vmem [resolvable:$true] %s51_s27 }
   0x5   :  { %s1238_s30 = scalar_lea.hbm %s1555_s1, 64 }
   0x6   :  { %p1239_p0 = scmp.ne.s32.totalorder %s1555_s1, %s1238_s30  ;;  %p1242_p1 = scmp.lt.u32.totalorder %s1238_s30, %s1555_s1 }
   0x8   :  { %p1244_p2 = pnand %p1242_p1, %p1239_p0 }
   0xa   :  { %1247 = shalt.err (!%p1244_p2)
}
   0xb   :  { %s1248_s12 = scalar_lea.vmem %s33_s25, 64  ;;  %p1253_p4 = scmp.lt.s32.totalorder %s33_s25, %s33_s25 }
   0xc   :  { %p1249_p3 = scmp.ne.s32.totalorder %s33_s25, %s1248_s12  ;;  %p1254_p5 = scmp.lt.s32.totalorder %s1248_s12, %s1248_s12 }
   0xe   :  { %p1255_p6 = por %p1254_p5, %p1253_p4 }
  0x10   :  { %p1256_p7 = pnand %p1255_p6, %p1249_p3 }
  0x12   :  { %1259 = shalt.err (!%p1256_p7)
}
  0x13   :  { %35 = dma.hbm_to_vmem [thread:$0]  %s1555_s1, 64, %s33_s25, [#allocation6]  }
  0x14   :  { %s1260_s17 = scalar_lea.hbm %s1557_s3, 5120 }
  0x15   :  { %p1261_p8 = scmp.ne.s32.totalorder %s1557_s3, %s1260_s17  ;;  %p1264_p9 = scmp.lt.u32.totalorder %s1260_s17, %s1557_s3 }
  0x17   :  { %p1266_p10 = pnand %p1264_p9, %p1261_p8 }
  0x19   :  { %1269 = shalt.err (!%p1266_p10)
}
  0x1a   :  { %s1270_s22 = scalar_lea.vmem %s1429_s27, 5120  ;;  %p1275_p12 = scmp.lt.s32.totalorder %s1429_s27, %s1429_s27 }
  0x1b   :  { %p1271_p11 = scmp.ne.s32.totalorder %s1429_s27, %s1270_s22  ;;  %p1276_p13 = scmp.lt.s32.totalorder %s1270_s22, %s1270_s22 }
  0x1d   :  { %p1277_p0 = por %p1276_p13, %p1275_p12 }
  0x1f   :  { %p1278_p1 = pnand %p1277_p0, %p1271_p11 }
  0x21   :  { %1281 = shalt.err (!%p1278_p1)
}
  0x22   :  { %s1380_s1 = smov 320   ;;  %s1381_s23 = smov 20  }
  0x23   :  { %57 = dma.hbm_to_vmem [thread:$0]  %s1557_s3, 5120, %s1429_s27, [#allocation9], %s1380_s1, %s1380_s1, %s1381_s23  }
  0x24   :  { %s1382_s26 = smov [#allocation2]   ;;  %s1383_s29 = smov [#allocation7]  }
  0x25   :  { %s22_s28 = sshll.u32 %s1382_s26, 4  ;;  %s42_s30 = sshll.u32 %s1383_s29, 4  ;;  %s23_s28 = int_to_ptr.vmem [resolvable:$true] %s22_s28  ;;  %s43_s30 = int_to_ptr.vmem [resolvable:$true] %s42_s30 }
  0x26   :  { %s1282_s10 = scalar_lea.hbm %s1554_s0, 64 }
  0x27   :  { %p1283_p2 = scmp.ne.s32.totalorder %s1554_s0, %s1282_s10  ;;  %p1286_p3 = scmp.lt.u32.totalorder %s1282_s10, %s1554_s0 }
  0x29   :  { %p1288_p4 = pnand %p1286_p3, %p1283_p2 }
  0x2b   :  { %1291 = shalt.err (!%p1288_p4)
}
  0x2c   :  { %s1292_s3 = scalar_lea.vmem %s23_s28, 64  ;;  %p1297_p6 = scmp.lt.s32.totalorder %s23_s28, %s23_s28 }
  0x2d   :  { %p1293_p5 = scmp.ne.s32.totalorder %s23_s28, %s1292_s3  ;;  %p1298_p7 = scmp.lt.s32.totalorder %s1292_s3, %s1292_s3 }
  0x2f   :  { %p1299_p8 = por %p1298_p7, %p1297_p6 }
  0x31   :  { %p1300_p9 = pnand %p1299_p8, %p1293_p5 }
  0x33   :  { %1303 = shalt.err (!%p1300_p9)
}
  0x34   :  { %25 = dma.hbm_to_vmem [thread:$0]  %s1554_s0, 64, %s23_s28, [#allocation3]  }
  0x35   :  { %s1304_s18 = scalar_lea.hbm %s1556_s2, 128 }
  0x36   :  { %p1305_p10 = scmp.ne.s32.totalorder %s1556_s2, %s1304_s18  ;;  %p1308_p11 = scmp.lt.u32.totalorder %s1304_s18, %s1556_s2 }
  0x38   :  { %p1310_p12 = pnand %p1308_p11, %p1305_p10 }
  0x3a   :  { %1313 = shalt.err (!%p1310_p12)
}
  0x3b   :  { %s1314_s24 = scalar_lea.vmem %s43_s30, 128  ;;  %p1319_p0 = scmp.lt.s32.totalorder %s43_s30, %s43_s30 }
  0x3c   :  { %p1315_p13 = scmp.ne.s32.totalorder %s43_s30, %s1314_s24  ;;  %p1320_p1 = scmp.lt.s32.totalorder %s1314_s24, %s1314_s24 }
  0x3e   :  { %p1321_p2 = por %p1320_p1, %p1319_p0 }
  0x40   :  { %p1322_p3 = pnand %p1321_p2, %p1315_p13 }
  0x42   :  { %1325 = shalt.err (!%p1322_p3)
}
  0x43   :  { %45 = dma.hbm_to_vmem [thread:$0]  %s1556_s2, 128, %s43_s30, [#allocation6]  }
  0x44   :  { %s1384_s26 = smov [#allocation10]   ;;  %s1326_s9 = scalar_lea.hbm %s1558_s4, 5120 }
  0x45   :  { %s63_s28 = sshll.u32 %s1384_s26, 4  ;;  %p1327_p4 = scmp.ne.s32.totalorder %s1558_s4, %s1326_s9  ;;  %s64_s28 = int_to_ptr.vmem [resolvable:$true] %s63_s28 }
  0x46   :  { %p1330_p5 = scmp.lt.u32.totalorder %s1326_s9, %s1558_s4 }
  0x48   :  { %p1332_p6 = pnand %p1330_p5, %p1327_p4 }
  0x4a   :  { %1335 = shalt.err (!%p1332_p6)
}
  0x4b   :  { %s1336_s14 = scalar_lea.vmem %s64_s28, 5120  ;;  %p1341_p8 = scmp.lt.s32.totalorder %s64_s28, %s64_s28 }
  0x4c   :  { %p1337_p7 = scmp.ne.s32.totalorder %s64_s28, %s1336_s14  ;;  %p1342_p9 = scmp.lt.s32.totalorder %s1336_s14, %s1336_s14 }
  0x4e   :  { %p1343_p10 = por %p1342_p9, %p1341_p8 }
  0x50   :  { %p1344_p11 = pnand %p1343_p10, %p1337_p7 }
  0x52   :  { %1347 = shalt.err (!%p1344_p11)
}
  0x53   :  { %69 = dma.hbm_to_vmem [thread:$0]  %s1558_s4, 5120, %s64_s28, [#allocation9], %s1380_s1, %s1380_s1, %s1381_s23  }
  0x54   :  { %1370 = dma.done.wait [#allocation3], 64  }
  0x55   :  { %1371 = vsyncadd [#allocation3], 4294967232 }
  0x56   :  { %1372 = dma.done.wait [#allocation6], 192  }
  0x57   :  { %1373 = vsyncadd [#allocation6], 4294967104 }
  0x58   :  { %1374 = dma.done.wait [#allocation9], 10240  }
  0x59   :  { %1375 = vsyncadd [#allocation9], 4294957056  ;;  %v1385_v0 = vmov 0.0   ;;  %v1386_v1 = vmov 0   ;;  %vm1387_vm0 = vmmov 0   ;;  %v1519_v58 = vld [vmem:[#allocation7] sm:$0xff] }
  0x5a   :  { %1046 = vmatprep.subr.bf16.mxu0 %v1385_v0  ;;  %408 = vmatprep.mubr.bf16.mxu1 %v1386_v1  ;;  %v1106_v2 = vld [vmem:[#allocation8 + $0x4] ss:$20 sps:$4 sm:$0xff]   ;;  %v1109_v4 = vld [vmem:[#allocation8] ss:$20 sps:$4 sm:$0xff]   ;;  %v1113_v7 = vld [vmem:[#allocation8 + $0x28] ss:$20 sps:$4 sm:$0xff]   ;;  %v92_v61 = vpack.c.bf16 %v1519_v58, %v1519_v58 }
  0x5b   :  { %1062 = vmatprep.mubr.msk.bf16.mxu0 %vm1387_vm0, %v1385_v0  ;;  %v1108_v3 = vld [vmem:[#allocation8 + $0x10] ss:$20 sps:$4 sm:$0xff]   ;;  %376 = vmatprep.subr.bf16.mxu1 %v1106_v2  ;;  %v1110_v5 = vld [vmem:[#allocation8 + $0x2c] ss:$20 sps:$4 sm:$0xff]   ;;  %v1114_v8 = vld [vmem:[#allocation8 + $0x54] ss:$20 sps:$4 sm:$0xff]  }
  0x5c   :  { %1047 = vmatpush3.bf16.msra.mxu0 %v1108_v3  ;;  %377 = vmatpush1.bf16.msra.mxu1 %v1109_v4  ;;  %v1112_v6 = vld [vmem:[#allocation8 + $0x38] ss:$20 sps:$4 sm:$0xff]   ;;  %v1116_v9 = vld [vmem:[#allocation8 + $0x60] ss:$20 sps:$4 sm:$0xff]   ;;  %v1117_v10 = vld [vmem:[#allocation8 + $0x50] ss:$20 sps:$4 sm:$0xff]  }
  0x5d   :  { %1048 = vmatprep.subr.bf16.mxu0 %v1385_v0  ;;  %378 = vmatprep.subr.bf16.mxu1 %v1110_v5  ;;  %v1118_v11 = vld [vmem:[#allocation8 + $0x7c] ss:$20 sps:$4 sm:$0xff]   ;;  %v1121_v13 = vld [vmem:[#allocation8 + $0x78] ss:$20 sps:$4 sm:$0xff]   ;;  %v1125_v16 = vld [vmem:[#allocation8 + $0xa0] ss:$20 sps:$4 sm:$0xff]  }
  0x5e   :  { %v1120_v12 = vld [vmem:[#allocation8 + $0x88] ss:$20 sps:$4 sm:$0xff]   ;;  %v1122_v14 = vld [vmem:[#allocation8 + $0xa4] ss:$20 sps:$4 sm:$0xff]   ;;  %v1126_v17 = vld [vmem:[#allocation8 + $0xcc] ss:$20 sps:$4 sm:$0xff]  }
  0x5f   :  { %v1124_v15 = vld [vmem:[#allocation8 + $0xb0] ss:$20 sps:$4 sm:$0xff]   ;;  %v1128_v18 = vld [vmem:[#allocation8 + $0xd8] ss:$20 sps:$4 sm:$0xff]   ;;  %v1129_v19 = vld [vmem:[#allocation8 + $0xc8] ss:$20 sps:$4 sm:$0xff]  }
  0x60   :  { %1049 = vmatpush3.bf16.msra.mxu0 %v1112_v6  ;;  %379 = vmatpush1.bf16.msra.mxu1 %v1113_v7  ;;  %v1130_v20 = vld [vmem:[#allocation8 + $0xf4] ss:$20 sps:$4 sm:$0xff]   ;;  %v1133_v22 = vld [vmem:[#allocation8 + $0xf0] ss:$20 sps:$4 sm:$0xff]   ;;  %v1137_v25 = vld [vmem:[#allocation8 + $0x118] ss:$20 sps:$4 sm:$0xff]  }
  0x61   :  { %1050 = vmatprep.subr.bf16.mxu0 %v1385_v0  ;;  %380 = vmatprep.subr.bf16.mxu1 %v1114_v8  ;;  %v1132_v21 = vld [vmem:[#allocation8 + $0x100] ss:$20 sps:$4 sm:$0xff]   ;;  %v1134_v23 = vld [vmem:[#allocation8 + $0x11c] ss:$20 sps:$4 sm:$0xff]   ;;  %v1140_v26 = vld [vmem:[#allocation10 + $0x4] ss:$20 sps:$4 sm:$0xff]  }
  0x62   :  { %v1136_v24 = vld [vmem:[#allocation8 + $0x128] ss:$20 sps:$4 sm:$0xff]   ;;  %v1143_v27 = vld [vmem:[#allocation8 + $0xc] ss:$20 sps:$4 sm:$0xff]   ;;  %v1513_v29 = vld [vmem:[#allocation2] sm:$0xf] }
  0x63   :  { %v1138_v28 = vld [vmem:[#allocation10] ss:$20 sps:$4 sm:$0xff]   ;;  %v1141_v30 = vld [vmem:[#allocation8 + $0x8] ss:$20 sps:$4 sm:$0xff]   ;;  %v1147_v34 = vld [vmem:[#allocation8 + $0x30] ss:$20 sps:$4 sm:$0xff]  }
  0x64   :  { %1051 = vmatpush3.bf16.msra.mxu0 %v1116_v9  ;;  %381 = vmatpush1.bf16.msra.mxu1 %v1117_v10  ;;  %v1146_v31 = vld [vmem:[#allocation10 + $0x2c] ss:$20 sps:$4 sm:$0xff]   ;;  %v1149_v32 = vld [vmem:[#allocation8 + $0x34] ss:$20 sps:$4 sm:$0xff]   ;;  %v1155_v36 = vld [vmem:[#allocation8 + $0x5c] ss:$20 sps:$4 sm:$0xff]  }
  0x65   :  { %1052 = vmatprep.subr.bf16.mxu0 %v1385_v0  ;;  %382 = vmatprep.subr.bf16.mxu1 %v1118_v11  ;;  %v1144_v33 = vld [vmem:[#allocation10 + $0x28] ss:$20 sps:$4 sm:$0xff]   ;;  %v1150_v37 = vld [vmem:[#allocation10 + $0x50] ss:$20 sps:$4 sm:$0xff]   ;;  %v1153_v38 = vld [vmem:[#allocation8 + $0x58] ss:$20 sps:$4 sm:$0xff]  }
  0x66   :  { %v1152_v35 = vld [vmem:[#allocation10 + $0x54] ss:$20 sps:$4 sm:$0xff]   ;;  %v1158_v39 = vld [vmem:[#allocation10 + $0x7c] ss:$20 sps:$4 sm:$0xff]   ;;  %v1161_v40 = vld [vmem:[#allocation8 + $0x84] ss:$20 sps:$4 sm:$0xff]  }
  0x67   :  { %v1156_v41 = vld [vmem:[#allocation10 + $0x78] ss:$20 sps:$4 sm:$0xff]   ;;  %v1159_v42 = vld [vmem:[#allocation8 + $0x80] ss:$20 sps:$4 sm:$0xff]   ;;  %v1165_v46 = vld [vmem:[#allocation8 + $0xa8] ss:$20 sps:$4 sm:$0xff]  }
  0x68   :  { %1053 = vmatpush3.bf16.msra.mxu0 %v1120_v12  ;;  %383 = vmatpush1.bf16.msra.mxu1 %v1121_v13  ;;  %v1164_v43 = vld [vmem:[#allocation10 + $0xa4] ss:$20 sps:$4 sm:$0xff]   ;;  %v1167_v44 = vld [vmem:[#allocation8 + $0xac] ss:$20 sps:$4 sm:$0xff]   ;;  %v1173_v48 = vld [vmem:[#allocation8 + $0xd4] ss:$20 sps:$4 sm:$0xff]  }
  0x69   :  { %1054 = vmatprep.subr.bf16.mxu0 %v1385_v0  ;;  %384 = vmatprep.subr.bf16.mxu1 %v1122_v14  ;;  %v1162_v45 = vld [vmem:[#allocation10 + $0xa0] ss:$20 sps:$4 sm:$0xff]   ;;  %v1168_v49 = vld [vmem:[#allocation10 + $0xc8] ss:$20 sps:$4 sm:$0xff]   ;;  %v1171_v50 = vld [vmem:[#allocation8 + $0xd0] ss:$20 sps:$4 sm:$0xff]  }
  0x6a   :  { %v1170_v47 = vld [vmem:[#allocation10 + $0xcc] ss:$20 sps:$4 sm:$0xff]   ;;  %v1176_v51 = vld [vmem:[#allocation10 + $0xf4] ss:$20 sps:$4 sm:$0xff]   ;;  %v1179_v52 = vld [vmem:[#allocation8 + $0xfc] ss:$20 sps:$4 sm:$0xff]  }
  0x6b   :  { %v1174_v53 = vld [vmem:[#allocation10 + $0xf0] ss:$20 sps:$4 sm:$0xff]   ;;  %v1177_v54 = vld [vmem:[#allocation8 + $0xf8] ss:$20 sps:$4 sm:$0xff]   ;;  %v1183_v59 = vld [vmem:[#allocation8 + $0x120] ss:$20 sps:$4 sm:$0xff]  }
  0x6c   :  { %1055 = vmatpush3.bf16.msra.mxu0 %v1124_v15  ;;  %385 = vmatpush1.bf16.msra.mxu1 %v1125_v16  ;;  %v1182_v55 = vld [vmem:[#allocation10 + $0x11c] ss:$20 sps:$4 sm:$0xff]   ;;  %v1185_v56 = vld [vmem:[#allocation8 + $0x124] ss:$20 sps:$4 sm:$0xff]   ;;  %v1188_v60 = vld [vmem:[#allocation10 + $0xc] ss:$20 sps:$4 sm:$0xff]  }
  0x6d   :  { %1056 = vmatprep.subr.bf16.mxu0 %v1385_v0  ;;  %386 = vmatprep.subr.bf16.mxu1 %v1126_v17  ;;  %v1180_v57 = vld [vmem:[#allocation10 + $0x118] ss:$20 sps:$4 sm:$0xff]   ;;  %v1189_v62 = vld [vmem:[#allocation10 + $0x10] ss:$20 sps:$4 sm:$0xff]   ;;  %v1186_v63 = vld [vmem:[#allocation10 + $0x8] ss:$20 sps:$4 sm:$0xff]  }
  0x6e   :  { %v1192_v2 = vld [vmem:[#allocation10 + $0x34] ss:$20 sps:$4 sm:$0xff]   ;;  %v1193_v3 = vld [vmem:[#allocation10 + $0x38] ss:$20 sps:$4 sm:$0xff]   ;;  %v1190_v4 = vld [vmem:[#allocation10 + $0x30] ss:$20 sps:$4 sm:$0xff]  }
  0x6f   :  { %v1196_v5 = vld [vmem:[#allocation10 + $0x5c] ss:$20 sps:$4 sm:$0xff]   ;;  %v1197_v6 = vld [vmem:[#allocation10 + $0x60] ss:$20 sps:$4 sm:$0xff]   ;;  %v1194_v7 = vld [vmem:[#allocation10 + $0x58] ss:$20 sps:$4 sm:$0xff]  }
  0x70   :  { %1057 = vmatpush3.bf16.msra.mxu0 %v1128_v18  ;;  %387 = vmatpush1.bf16.msra.mxu1 %v1129_v19  ;;  %v1200_v8 = vld [vmem:[#allocation10 + $0x84] ss:$20 sps:$4 sm:$0xff]   ;;  %v1201_v9 = vld [vmem:[#allocation10 + $0x88] ss:$20 sps:$4 sm:$0xff]   ;;  %v1198_v10 = vld [vmem:[#allocation10 + $0x80] ss:$20 sps:$4 sm:$0xff]  }
  0x71   :  { %1058 = vmatprep.subr.bf16.mxu0 %v1385_v0  ;;  %388 = vmatprep.subr.bf16.mxu1 %v1130_v20  ;;  %v1204_v11 = vld [vmem:[#allocation10 + $0xac] ss:$20 sps:$4 sm:$0xff]   ;;  %v1205_v12 = vld [vmem:[#allocation10 + $0xb0] ss:$20 sps:$4 sm:$0xff]   ;;  %v1208_v13 = vld [vmem:[#allocation10 + $0xd4] ss:$20 sps:$4 sm:$0xff]  }
  0x72   :  { %v1209_v14 = vld [vmem:[#allocation10 + $0xd8] ss:$20 sps:$4 sm:$0xff]   ;;  %v1206_v15 = vld [vmem:[#allocation10 + $0xd0] ss:$20 sps:$4 sm:$0xff]   ;;  %v1213_v17 = vld [vmem:[#allocation10 + $0x100] ss:$20 sps:$4 sm:$0xff]  }
  0x73   :  { %v1212_v16 = vld [vmem:[#allocation10 + $0xfc] ss:$20 sps:$4 sm:$0xff]   ;;  %v1210_v18 = vld [vmem:[#allocation10 + $0xf8] ss:$20 sps:$4 sm:$0xff]  }
  0x74   :  { %1059 = vmatpush3.bf16.msra.mxu0 %v1132_v21  ;;  %389 = vmatpush1.bf16.msra.mxu1 %v1133_v22  ;;  %v1216_v19 = vld [vmem:[#allocation10 + $0x124] ss:$20 sps:$4 sm:$0xff]   ;;  %v1217_v20 = vld [vmem:[#allocation10 + $0x128] ss:$20 sps:$4 sm:$0xff]   ;;  %v1214_v21 = vld [vmem:[#allocation10 + $0x120] ss:$20 sps:$4 sm:$0xff]  }
  0x75   :  { %1060 = vmatprep.subr.bf16.mxu0 %v1385_v0  ;;  %390 = vmatprep.subr.bf16.mxu1 %v1134_v23 }
  0x78   :  { %1061 = vmatpush3.bf16.msra.mxu0 %v1136_v24  ;;  %391 = vmatpush1.bf16.msra.mxu1 %v1137_v25 }
  0x79   :  { %754 = vmatprep.subr.bf16.mxu0 %v1140_v26  ;;  %417 = vmatprep.subr.bf16.mxu1 %v1143_v27  ;;  %v143_v26 = vlaneseq }
  0x7b   :  { %1063 = vmatmul.mubr.bf16.vlgmr.msra.gmra.mrb[0].mxu0 %v1513_v29  ;;  %409 = vmatmul.mubr.bf16.vlgmr.msra.gmra.mrb[0].mxu1 %v1513_v29  ;;  %v144_v27 = vshrl.u32 %v143_v26, 7 }
  0x7c   :  { %755 = vmatpush1.bf16.msra.mxu0 %v1138_v28  ;;  %418 = vmatpush1.bf16.msra.mxu1 %v1141_v30 }
  0x7d   :  { %756 = vmatprep.subr.bf16.mxu0 %v1146_v31  ;;  %419 = vmatprep.subr.bf16.mxu1 %v1149_v32  ;;  %v145_v28 = vsub.s32 0, %v144_v27  ;;  %v149_v30 = vsub.s32 1, %v144_v27 }
  0x7e   :  { %786 = vmatprep.mubr.bf16.mxu0 %v1386_v1  ;;  %449 = vmatprep.mubr.bf16.mxu1 %v1386_v1 }
  0x80   :  { %757 = vmatpush1.bf16.msra.mxu0 %v1144_v33  ;;  %420 = vmatpush1.bf16.msra.mxu1 %v1147_v34 }
  0x81   :  { %758 = vmatprep.subr.bf16.mxu0 %v1152_v35  ;;  %421 = vmatprep.subr.bf16.mxu1 %v1155_v36 }
  0x84   :  { %759 = vmatpush1.bf16.msra.mxu0 %v1150_v37  ;;  %422 = vmatpush1.bf16.msra.mxu1 %v1153_v38 }
  0x85   :  { %760 = vmatprep.subr.bf16.mxu0 %v1158_v39  ;;  %423 = vmatprep.subr.bf16.mxu1 %v1161_v40 }
  0x88   :  { %761 = vmatpush1.bf16.msra.mxu0 %v1156_v41  ;;  %424 = vmatpush1.bf16.msra.mxu1 %v1159_v42 }
  0x89   :  { %762 = vmatprep.subr.bf16.mxu0 %v1164_v43  ;;  %425 = vmatprep.subr.bf16.mxu1 %v1167_v44 }
  0x8c   :  { %763 = vmatpush1.bf16.msra.mxu0 %v1162_v45  ;;  %426 = vmatpush1.bf16.msra.mxu1 %v1165_v46 }
  0x8d   :  { %764 = vmatprep.subr.bf16.mxu0 %v1170_v47  ;;  %427 = vmatprep.subr.bf16.mxu1 %v1173_v48  ;;  %v157_v47 = vsub.s32 3, %v144_v27  ;;  %v161_v48 = vsub.s32 4, %v144_v27 }
  0x90   :  { %765 = vmatpush1.bf16.msra.mxu0 %v1168_v49  ;;  %428 = vmatpush1.bf16.msra.mxu1 %v1171_v50  ;;  %v153_v49 = vsub.s32 2, %v144_v27 }
  0x91   :  { %766 = vmatprep.subr.bf16.mxu0 %v1176_v51  ;;  %429 = vmatprep.subr.bf16.mxu1 %v1179_v52 }
  0x94   :  { %767 = vmatpush1.bf16.msra.mxu0 %v1174_v53  ;;  %430 = vmatpush1.bf16.msra.mxu1 %v1177_v54  ;;  %v1025_v53 = vld [vmem:[%s1560_s6] ss:$0 sm:$0xff]  ;;  %s1388_s6 = smov [#allocation11]  }
  0x95   :  { %768 = vmatprep.subr.bf16.mxu0 %v1182_v55  ;;  %431 = vmatprep.subr.bf16.mxu1 %v1185_v56  ;;  %s932_s3 = sshll.u32 %s1388_s6, 4  ;;  %s933_s3 = int_to_ptr.vmem [resolvable:$true] %s932_s3 }
  0x96   :  { %s1348_s27 = scalar_lea.vmem %s933_s3, 128  ;;  %p1353_p13 = scmp.lt.s32.totalorder %s933_s3, %s933_s3 }
  0x97   :  { %p1349_p12 = scmp.ne.s32.totalorder %s933_s3, %s1348_s27  ;;  %p1354_p0 = scmp.lt.s32.totalorder %s1348_s27, %s1348_s27 }
  0x98   :  { %769 = vmatpush1.bf16.msra.mxu0 %v1180_v57  ;;  %432 = vmatpush1.bf16.msra.mxu1 %v1183_v59 }
  0x99   :  { %1066 = vmatprep.subr.bf16.mxu0 %v1385_v0  ;;  %795 = vmatprep.subr.bf16.mxu1 %v1188_v60  ;;  %p1355_p1 = por %p1354_p0, %p1353_p13 }
  0x9b   :  { %787 = vmatmul.mubr.bf16.vlgmr.msra.gmra.mrb[4].mxu0 %v92_v61  ;;  %450 = vmatmul.mubr.bf16.vlgmr.msra.gmra.mrb[4].mxu1 %v1513_v29  ;;  %v141_v29 = vld [vmem:[%s1559_s5] sm:$0x1f]  ;;  %p1356_p2 = pnand %p1355_p1, %p1349_p12 }
  0x9c   :  { %1067 = vmatpush3.bf16.msra.mxu0 %v1189_v62  ;;  %796 = vmatpush1.bf16.msra.mxu1 %v1186_v63  ;;  %v146_v31 = vrot.slane %v141_v29, %v145_v28  ;;  %v158_v51 = vrot.slane %v141_v29, %v157_v47  ;;  %v162_v52 = vrot.slane %v141_v29, %v161_v48 }
  0x9d   :  { %1068 = vmatprep.subr.bf16.mxu0 %v1385_v0  ;;  %797 = vmatprep.subr.bf16.mxu1 %v1192_v2  ;;  %v154_v54 = vrot.slane %v141_v29, %v153_v49 }
  0x9e   :  { %1082 = vmatprep.mubr.msk.bf16.mxu0 %vm1387_vm0, %v1385_v0  ;;  %827 = vmatprep.mubr.bf16.mxu1 %v1386_v1  ;;  %v1202_v1 = vld [vmem:[#allocation10 + $0xa8] ss:$20 sps:$4 sm:$0xff]  }
  0xa0   :  { %1069 = vmatpush3.bf16.msra.mxu0 %v1193_v3  ;;  %798 = vmatpush1.bf16.msra.mxu1 %v1190_v4 }
  0xa1   :  { %1070 = vmatprep.subr.bf16.mxu0 %v1385_v0  ;;  %799 = vmatprep.subr.bf16.mxu1 %v1196_v5 }
  0xa4   :  { %1071 = vmatpush3.bf16.msra.mxu0 %v1197_v6  ;;  %800 = vmatpush1.bf16.msra.mxu1 %v1194_v7 }
  0xa5   :  { %1072 = vmatprep.subr.bf16.mxu0 %v1385_v0  ;;  %801 = vmatprep.subr.bf16.mxu1 %v1200_v8 }
  0xa8   :  { %1073 = vmatpush3.bf16.msra.mxu0 %v1201_v9  ;;  %802 = vmatpush1.bf16.msra.mxu1 %v1198_v10 }
  0xa9   :  { %1074 = vmatprep.subr.bf16.mxu0 %v1385_v0  ;;  %803 = vmatprep.subr.bf16.mxu1 %v1204_v11 }
  0xac   :  { %1075 = vmatpush3.bf16.msra.mxu0 %v1205_v12  ;;  %804 = vmatpush1.bf16.msra.mxu1 %v1202_v1 }
  0xad   :  { %1076 = vmatprep.subr.bf16.mxu0 %v1385_v0  ;;  %805 = vmatprep.subr.bf16.mxu1 %v1208_v13  ;;  %v916_v13 = vld [vmem:[#allocation5] sm:$0xf] }
  0xb0   :  { %1077 = vmatpush3.bf16.msra.mxu0 %v1209_v14  ;;  %806 = vmatpush1.bf16.msra.mxu1 %v1206_v15 }
  0xb1   :  { %1078 = vmatprep.subr.bf16.mxu0 %v1385_v0  ;;  %807 = vmatprep.subr.bf16.mxu1 %v1212_v16  ;;  %v917_v16 = vunpack.c.l.bf16 %v916_v13 }
  0xb4   :  { %1079 = vmatpush3.bf16.msra.mxu0 %v1213_v17  ;;  %808 = vmatpush1.bf16.msra.mxu1 %v1210_v18 }
  0xb5   :  { %1080 = vmatprep.subr.bf16.mxu0 %v1385_v0  ;;  %809 = vmatprep.subr.bf16.mxu1 %v1216_v19  ;;  %v150_v0 = vrot.slane %v141_v29, %v149_v30 }
  0xb8   :  { %1081 = vmatpush3.bf16.msra.mxu0 %v1217_v20  ;;  %810 = vmatpush1.bf16.msra.mxu1 %v1214_v21 }
  0xbb   :  { %1083 = vmatmul.mubr.bf16.vlgmr.msra.gmra.mrb[0].mxu0 %v92_v61  ;;  %828 = vmatmul.mubr.bf16.vlgmr.msra.gmra.mrb[8].mxu1 %v92_v61 }
 0x14e   :  { %v410_v22 = vpop.f32.mrb[0].mxu1 }
 0x14f   :  { %v412_v23 = vpop.f32.mrb[1].mxu1  ;;  %v411_v32 = vadd.f32 %v410_v22, %v146_v31 }
 0x150   :  { %v414_v24 = vpop.f32.mrb[2].mxu1  ;;  %v413_v33 = vadd.f32 %v412_v23, %v150_v0 }
 0x151   :  { %v415_v25 = vpop.f32.mrb[3].mxu1 }
 0x16e   :  { %v788_v34 = vpop.f32.mrb[4].mxu0  ;;  %v451_v36 = vpop.f32.mrb[4].mxu1 }
 0x16f   :  { %v876_v35 = vadd.f32 %v788_v34, %v411_v32  ;;  %v790_v37 = vpop.f32.mrb[5].mxu0  ;;  %v453_v39 = vpop.f32.mrb[5].mxu1  ;;  %v452_v7 = vadd.f32 %v451_v36, %v154_v54 }
 0x170   :  { %v883_v38 = vadd.f32 %v790_v37, %v413_v33  ;;  %v792_v40 = vpop.f32.mrb[6].mxu0  ;;  %v455_v41 = vpop.f32.mrb[6].mxu1  ;;  %v454_v56 = vadd.f32 %v453_v39, %v158_v51 }
 0x171   :  { %v793_v42 = vpop.f32.mrb[7].mxu0  ;;  %v456_v44 = vpop.f32.mrb[7].mxu1  ;;  %v1023_v50 = vmul.f32 -1.442695, %v876_v35 }
 0x172   :  { %v1024_v43 = vmul.f32 -1.442695, %v883_v38 }
 0x174   :  { %1218 = vpow2.f32 %v1024_v43 }
 0x17e   :  { %v1219_v45 = vpop.eup %1218 }
 0x17f   :  { %v887_v46 = vadd.f32 1.0, %v1219_v45 }
 0x181   :  { %1220 = vrcp.f32 %v887_v46 }
 0x182   :  { %1222 = vpow2.f32 %v1023_v50 }
 0x18b   :  { %v1221_v2 = vpop.eup %1220 }
 0x18c   :  { %v1223_v12 = vpop.eup %1222 }
 0x18d   :  { %v880_v1 = vadd.f32 1.0, %v1223_v12 }
 0x18e   :  { %v870_v55 = vpop.f32.mrb[0].mxu0  ;;  %v829_v59 = vpop.f32.mrb[8].mxu1 }
 0x18f   :  { %v1090_v57 = vadd.f32 %v870_v55, %v162_v52  ;;  %v1084_v60 = vpop.f32.mrb[1].mxu0  ;;  %v897_v61 = vadd.f32 %v1025_v53, %v829_v59  ;;  %v831_v62 = vpop.f32.mrb[9].mxu1 }
 0x190   :  { %v873_v63 = vpop.f32.mrb[2].mxu0  ;;  %v901_v4 = vadd.f32 %v831_v62, %v454_v56  ;;  %v833_v5 = vpop.f32.mrb[10].mxu1 }
 0x191   :  { %v1027_v3 = vmul.f32 -1.442695, %v1090_v57  ;;  %v1085_v6 = vpop.f32.mrb[3].mxu0  ;;  %v898_v8 = vmul.f32 %v1221_v2, %v897_v61  ;;  %v834_v9 = vpop.f32.mrb[11].mxu1 }
 0x192   :  { %v1026_v10 = vmul.f32 -1.442695, %v901_v4 }
 0x193   :  { %1224 = vpow2.f32 %v1027_v3  ;;  %v899_v11 = vadd.f32 %v898_v8, %v452_v7 }
 0x194   :  { %1226 = vpow2.f32 %v1026_v10 }
 0x195   :  { %1228 = vrcp.f32 %v880_v1 }
 0x196   :  { %1230 = vtanh.f32 %v899_v11 }
 0x19d   :  { %v1225_v14 = vpop.eup %1224 }
 0x19e   :  { %v1227_v15 = vpop.eup %1226  ;;  %v912_v17 = vadd.f32 1.0, %v1225_v14 }
 0x19f   :  { %v905_v18 = vadd.f32 1.0, %v1227_v15  ;;  %v1229_v19 = vpop.eup %1228 }
 0x1a0   :  { %v1231_v20 = vpop.eup %1230  ;;  %v919_v24 = vsub.f32 1.0, %v1229_v19  ;;  %v918_v26 = vmul.f32 %v1229_v19, %v1519_v58 }
 0x1a1   :  { %1232 = vrcp.f32 %v905_v18 }
 0x1a2   :  { %1234 = vtanh.f32 %v917_v16 }
 0x1a3   :  { %1236 = vrcp.f32 %v912_v17 }
 0x1ab   :  { %v1233_v21 = vpop.eup %1232 }
 0x1ac   :  { %v1235_v22 = vpop.eup %1234  ;;  %v915_v23 = vmul.f32 %v1233_v21, %v1231_v20 }
 0x1ad   :  { %v1237_v25 = vpop.eup %1236 }
 0x1ae   :  { %v920_v27 = vmul.f32 %v919_v24, %v915_v23  ;;  %v923_v29 = vmul.f32 %v1237_v25, %v1235_v22 }
 0x1b0   :  { %v921_v28 = vadd.f32 %v920_v27, %v918_v26 }
 0x1b2   :  { %v924_v30 = vadd.f32 %v923_v29, %v921_v28 }
 0x1b4   :  { %925 = vst [vmem:[#allocation11] sm:$0xff] %v924_v30 }
 0x1b5   :  { %1359 = shalt.err (!%p1356_p2)
}
 0x1b6   :  { %s1360_s17 = scalar_lea.hbm %s1561_s7, 128 }
 0x1b7   :  { %p1361_p3 = scmp.ne.s32.totalorder %s1561_s7, %s1360_s17  ;;  %p1364_p4 = scmp.lt.u32.totalorder %s1360_s17, %s1561_s7 }
 0x1b9   :  { %p1366_p5 = pnand %p1364_p4, %p1361_p3 }
 0x1bb   :  { %1369 = shalt.err (!%p1366_p5)
}
 0x1bc   :  { %935 = dma.vmem_to_hbm [thread:$0]  %s933_s3, 128, %s1561_s7, [#allocation4]  }
 0x1bd   :  { %1376 = dma.done.wait [#allocation4], 128  }
 0x1be   :  { %1377 = vsyncadd [#allocation4], 4294967168 }
 0x1bf   :  { %939 = vsyncpa [#allocation3], 1 }
 0x1c0   :  { %940 = vsyncpa [#allocation6], 1 }
 0x1c1   :  { %941 = vsyncpa [#allocation9], 1 }
 0x1c2   :  { %942 = vsyncpa [#allocation4], 1 }

</bundles_post_ra>
